<compile_context>
chip_gen: v5e
topology: v5e:2x2
jax: 0.10.0
libtpu: 0.0.40
codegen_flags: <defaults>
</compile_context>

<pallas_src>
import math

import jax
import jax.numpy as jnp
from jax import lax
from jax.experimental import pallas as pl
from jax.experimental.pallas import tpu as pltpu

# ----------------------------- config (small, deterministic) ----------------
B = 8            # number of examples; becomes the LSTM/attention sequence length
L_TOK = 16       # BERT token sequence length
VOCAB = 64
D_IN = 32        # args.input_size  (== BERT hidden size)
H = 32           # args.hidden_size
NUM_HEADS = 4    # args.num_heads
NUM_CLASSES = 3  # args.num_classes
FFN = 2 * H + D_IN               # bidirectional -> 2*H + input_size = 96
HEAD_DIM = FFN // NUM_HEADS      # 24 (real head width, used for 1/sqrt scaling)
HEAD_PAD = 32                    # lane-aligned padded head width
QKV_PAD = NUM_HEADS * HEAD_PAD   # 128
OUT_PAD = 128                    # lane-dense padded classifier output width

VMEM_SPEC = pl.BlockSpec(memory_space=pltpu.MemorySpace.VMEM)


# ----------------------------- fused kernel ----------------------------------
def bert_bilstm_kernel(wtok_ref, emb_ref, wp_ref, bp_ref,
                       wih_ref, whh_ref, blstm_ref, dmask_ref,
                       wqkv_ref, bqkv_ref, wo_ref, bo_ref,
                       w1_ref, b1_ref, w2_ref, b2_ref, o_ref):
    f32 = jnp.float32

    # --- 1. BERT stand-in pooler: normalized masked token counts @ emb, dense+tanh
    hidden = jnp.dot(wtok_ref[...], emb_ref[...],
                     preferred_element_type=f32)                       # [B, D_IN]
    pooled = jnp.tanh(jnp.dot(hidden, wp_ref[...],
                              preferred_element_type=f32) + bp_ref[...])  # [B, D_IN]

    # --- 2. bidirectional LSTM over the batch axis (seq_len = B, batch = 1) ---
    # Gate-interleaved layout over 8H lanes: [i_f i_b f_f f_b g_f g_b o_f o_b],
    # each block H wide.  Input gates for BOTH directions in one matmul:
    gx = jnp.dot(pooled, wih_ref[...],
                 preferred_element_type=f32) + blstm_ref[...]          # [B, 8H]
    dm = dmask_ref[...]                     # [1, 8H]; 1.0 on forward lanes
    gx_f = gx * dm                          # forward-direction lanes kept
    gx_b = gx * (1.0 - dm)                  # backward-direction lanes kept
    whh = whh_ref[...]                      # [2H, 8H] block-diagonal recurrence

    h_cat = jnp.zeros((1, 2 * H), f32)      # [h_fwd | h_bwd]
    c_cat = jnp.zeros((1, 2 * H), f32)
    fwd_rows = []
    bwd_rows = []
    for t in range(B):                      # static unroll, T = B = 8
        s = B - 1 - t                       # backward direction time index
        g = (gx_f[t:t + 1, :] + gx_b[s:s + 1, :]
             + jnp.dot(h_cat, whh, preferred_element_type=f32))        # [1, 8H]
        i_g = jax.nn.sigmoid(g[:, 0 * 2 * H:1 * 2 * H])   # [i_f | i_b]
        f_g = jax.nn.sigmoid(g[:, 1 * 2 * H:2 * 2 * H])   # [f_f | f_b]
        g_g = jnp.tanh(g[:, 2 * 2 * H:3 * 2 * H])         # [g_f | g_b]
        o_g = jax.nn.sigmoid(g[:, 3 * 2 * H:4 * 2 * H])   # [o_f | o_b]
        c_cat = f_g * c_cat + i_g * g_g
        h_cat = o_g * jnp.tanh(c_cat)
        fwd_rows.append(h_cat[:, :H])       # forward hidden at time t
        bwd_rows.append(h_cat[:, H:])       # backward hidden at time s
    lstm_fwd = jnp.concatenate(fwd_rows, axis=0)           # [B, H]
    lstm_bwd = jnp.concatenate(bwd_rows[::-1], axis=0)     # [B, H] in time order

    # --- 3. concat + multi-head self-attention (fused QKV, padded heads) -----
    # NOTE: the 1/sqrt(HEAD_DIM) scale is pre-folded into the Q columns of wqkv
    # (and bqkv) at weight-prep time, so no per-head scaling here.
    attn_in = jnp.concatenate([lstm_fwd, lstm_bwd, pooled], axis=1)    # [B, FFN]
    qkv = jnp.dot(attn_in, wqkv_ref[...],
                  preferred_element_type=f32) + bqkv_ref[...]          # [B, 3*QKV_PAD]
    q = qkv[:, 0:QKV_PAD]
    k = qkv[:, QKV_PAD:2 * QKV_PAD]
    v = qkv[:, 2 * QKV_PAD:3 * QKV_PAD]
    ctx_parts = []
    for hh in range(NUM_HEADS):             # static unroll over heads
        lo = hh * HEAD_PAD
        qh = q[:, lo:lo + HEAD_PAD]
        kh = k[:, lo:lo + HEAD_PAD]
        vh = v[:, lo:lo + HEAD_PAD]
        sc = lax.dot_general(qh, kh, (((1,), (1,)), ((), ())),
                             preferred_element_type=f32)               # [B, B]
        sc = sc - jnp.max(sc, axis=-1, keepdims=True)
        p = jnp.exp(sc)
        p = p * pl.reciprocal(jnp.sum(p, axis=-1, keepdims=True), approx=True)
        ctx_parts.append(jnp.dot(p, vh, preferred_element_type=f32))   # [B, HEAD_PAD]
    ctx = jnp.concatenate(ctx_parts, axis=1)                           # [B, QKV_PAD]
    attn_out = jnp.dot(ctx, wo_ref[...],
                       preferred_element_type=f32) + bo_ref[...]       # [B, FFN]

    # --- 4. dense head: Linear -> ReLU -> (Dropout=id) -> Linear (padded) ----
    hmid = jnp.maximum(
        jnp.dot(attn_out, w1_ref[...], preferred_element_type=f32) + b1_ref[...],
        0.0)                                                           # [B, 2*FFN]
    o_ref[...] = (jnp.dot(hmid, w2_ref[...], preferred_element_type=f32)
                  + b2_ref[...])                                       # [B, OUT_PAD]


# ----------------------------- pallas_call wrapper ----------------------------
def bert_bilstm_fused(wtok, p):
    out_pad = pl.pallas_call(
        bert_bilstm_kernel,
        out_shape=jax.ShapeDtypeStruct((B, OUT_PAD), jnp.float32),
        in_specs=[VMEM_SPEC] * 16,
        out_specs=VMEM_SPEC,
    )(wtok, p['emb'], p['wp'], p['bp'],
      p['wih'], p['whh'], p['blstm'], p['dmask'],
      p['wqkv'], p['bqkv'], p['wo'], p['bo'],
      p['w1'], p['b1'], p['w2'], p['b2'])
    return out_pad[:, :NUM_CLASSES]


# ----------------------------- parameters ------------------------------------
def init_raw_params(key):
    """PyTorch-style parameterization (gate order i,f,g,o; weights pre-transposed [in,out])."""
    ks = jax.random.split(key, 21)
    s = 0.05
    r = {}
    r['emb'] = jax.random.normal(ks[0], (VOCAB, D_IN), jnp.float32) * s
    r['wp'] = jax.random.normal(ks[1], (D_IN, D_IN), jnp.float32) * s
    r['bp'] = jax.random.normal(ks[2], (1, D_IN), jnp.float32) * s
    r['wih_f'] = jax.random.normal(ks[3], (D_IN, 4 * H), jnp.float32) * s
    r['whh_f'] = jax.random.normal(ks[4], (H, 4 * H), jnp.float32) * s
    r['b_f'] = jax.random.normal(ks[5], (1, 4 * H), jnp.float32) * s   # b_ih + b_hh folded
    r['wih_b'] = jax.random.normal(ks[6], (D_IN, 4 * H), jnp.float32) * s
    r['whh_b'] = jax.random.normal(ks[7], (H, 4 * H), jnp.float32) * s
    r['b_b'] = jax.random.normal(ks[8], (1, 4 * H), jnp.float32) * s
    r['wq'] = jax.random.normal(ks[9], (FFN, FFN), jnp.float32) * s
    r['wk'] = jax.random.normal(ks[10], (FFN, FFN), jnp.float32) * s
    r['wv'] = jax.random.normal(ks[11], (FFN, FFN), jnp.float32) * s
    r['bq'] = jax.random.normal(ks[12], (1, FFN), jnp.float32) * s
    r['bk'] = jax.random.normal(ks[13], (1, FFN), jnp.float32) * s
    r['bv'] = jax.random.normal(ks[14], (1, FFN), jnp.float32) * s
    r['wo'] = jax.random.normal(ks[15], (FFN, FFN), jnp.float32) * s
    r['bo'] = jax.random.normal(ks[16], (1, FFN), jnp.float32) * s
    r['w1'] = jax.random.normal(ks[17], (FFN, 2 * FFN), jnp.float32) * s
    r['b1'] = jax.random.normal(ks[18], (1, 2 * FFN), jnp.float32) * s
    r['w2'] = jax.random.normal(ks[19], (2 * FFN, NUM_CLASSES), jnp.float32) * s
    r['b2'] = jax.random.normal(ks[20], (1, NUM_CLASSES), jnp.float32) * s
    return r


def prepare_params(r):
    """One-time (outside the kernel) weight re-layout for the fused kernel."""
    p = {'emb': r['emb'], 'wp': r['wp'], 'bp': r['bp']}

    # --- BiLSTM: gate-interleaved columns [i_f i_b f_f f_b g_f g_b o_f o_b] ---
    def interleave(wf, wb):
        cols = []
        for g in range(4):
            cols.append(wf[:, g * H:(g + 1) * H])
            cols.append(wb[:, g * H:(g + 1) * H])
        return jnp.concatenate(cols, axis=1)

    p['wih'] = interleave(r['wih_f'], r['wih_b'])            # [D_IN, 8H]
    p['blstm'] = interleave(r['b_f'], r['b_b'])              # [1, 8H]
    whh = jnp.zeros((2 * H, 8 * H), jnp.float32)             # block-diagonal recurrence
    for g in range(4):
        whh = whh.at[:H, (2 * g) * H:(2 * g + 1) * H].set(r['whh_f'][:, g * H:(g + 1) * H])
        whh = whh.at[H:, (2 * g + 1) * H:(2 * g + 2) * H].set(r['whh_b'][:, g * H:(g + 1) * H])
    p['whh'] = whh                                           # [2H, 8H]
    dmask = jnp.tile(jnp.concatenate([jnp.ones((1, H), jnp.float32),
                                      jnp.zeros((1, H), jnp.float32)], axis=1), (1, 4))
    p['dmask'] = dmask                                       # [1, 8H]

    # --- MHA: fused QKV with per-head zero-padding (24 -> 32 lanes, exact) ---
    def pad_head_cols(w):                                    # [*, FFN] -> [*, QKV_PAD]
        blocks = []
        for hh in range(NUM_HEADS):
            blk = w[:, hh * HEAD_DIM:(hh + 1) * HEAD_DIM]
            blocks.append(jnp.pad(blk, ((0, 0), (0, HEAD_PAD - HEAD_DIM))))
        return jnp.concatenate(blocks, axis=1)

    # Fold the 1/sqrt(head_dim) attention scale into the Q projection so the
    # kernel does no per-head scaling (prep-time, numerically equivalent).
    scale = 1.0 / math.sqrt(HEAD_DIM)
    p['wqkv'] = jnp.concatenate([pad_head_cols(r['wq']) * scale,
                                 pad_head_cols(r['wk']),
                                 pad_head_cols(r['wv'])], axis=1)   # [FFN, 3*QKV_PAD]
    p['bqkv'] = jnp.concatenate([pad_head_cols(r['bq']) * scale,
                                 pad_head_cols(r['bk']),
                                 pad_head_cols(r['bv'])], axis=1)   # [1, 3*QKV_PAD]
    wo_blocks = []
    for hh in range(NUM_HEADS):                              # out-proj rows match padded ctx
        blk = r['wo'][hh * HEAD_DIM:(hh + 1) * HEAD_DIM, :]
        wo_blocks.append(jnp.pad(blk, ((0, HEAD_PAD - HEAD_DIM), (0, 0))))
    p['wo'] = jnp.concatenate(wo_blocks, axis=0)             # [QKV_PAD, FFN]
    p['bo'] = r['bo']

    # --- dense head: pad classifier to a lane-dense 128-wide output ---
    p['w1'] = r['w1']
    p['b1'] = r['b1']
    p['w2'] = jnp.pad(r['w2'], ((0, 0), (0, OUT_PAD - NUM_CLASSES)))   # [2*FFN, OUT_PAD]
    p['b2'] = jnp.pad(r['b2'], ((0, 0), (0, OUT_PAD - NUM_CLASSES)))   # [1, OUT_PAD]
    return p


# ----------------------------- forward ---------------------------------------
def forward(input_ids, attention_mask, p):
    ids = input_ids[:, 0, :]                                   # squeeze(1) -> [B, L_TOK]
    mask = attention_mask[:, 0, :].astype(jnp.float32)         # squeeze(1) -> [B, L_TOK]

    # Integer one-hot + mask reduction stays in plain XLA (tiny, fused by XLA);
    # the embedding-table matmul / pooler / LSTM / MHA / head run in ONE kernel.
    onehot = jax.nn.one_hot(ids, VOCAB, dtype=jnp.float32)     # [B, L_TOK, VOCAB]
    denom = jnp.maximum(mask.sum(axis=1, keepdims=True), 1.0)  # [B, 1]
    wtok = (onehot * mask[..., None]).sum(axis=1) / denom      # [B, VOCAB] normalized counts

    return bert_bilstm_fused(wtok, p)                          # [B, NUM_CLASSES]


# ----------------------------- main ------------------------------------------
if __name__ == "__main__":
    key = jax.random.PRNGKey(0)
    k_ids, k_len, k_par = jax.random.split(key, 3)

    input_ids = jax.random.randint(k_ids, (B, 1, L_TOK), 0, VOCAB, dtype=jnp.int32)
    lengths = jax.random.randint(k_len, (B, 1, 1), L_TOK // 2, L_TOK + 1)
    pos = jnp.arange(L_TOK, dtype=jnp.int32)[None, None, :]
    attention_mask = (pos < lengths).astype(jnp.int32)         # [B, 1, L_TOK]

    raw = init_raw_params(k_par)
    params = prepare_params(raw)                               # one-time weight re-layout

    out = jax.jit(forward)(input_ids, attention_mask, params)
    out = jax.block_until_ready(out)
    assert out.shape == (B, NUM_CLASSES), out.shape
    assert jnp.all(jnp.isfinite(out))
    print("KERNEL_OK")
</pallas_src>

<mosaic_0001>
module attributes {stable_mosaic.version = 11 : i64} {
  func.func @bert_bilstm_kernel(%arg0: memref<8x64xf32, #tpu.memory_space<vmem>>, %arg1: memref<64x32xf32, #tpu.memory_space<vmem>>, %arg2: memref<32x32xf32, #tpu.memory_space<vmem>>, %arg3: memref<1x32xf32, #tpu.memory_space<vmem>>, %arg4: memref<32x256xf32, #tpu.memory_space<vmem>>, %arg5: memref<64x256xf32, #tpu.memory_space<vmem>>, %arg6: memref<1x256xf32, #tpu.memory_space<vmem>>, %arg7: memref<1x256xf32, #tpu.memory_space<vmem>>, %arg8: memref<96x384xf32, #tpu.memory_space<vmem>>, %arg9: memref<1x384xf32, #tpu.memory_space<vmem>>, %arg10: memref<128x96xf32, #tpu.memory_space<vmem>>, %arg11: memref<1x96xf32, #tpu.memory_space<vmem>>, %arg12: memref<96x192xf32, #tpu.memory_space<vmem>>, %arg13: memref<1x192xf32, #tpu.memory_space<vmem>>, %arg14: memref<192x128xf32, #tpu.memory_space<vmem>>, %arg15: memref<1x128xf32, #tpu.memory_space<vmem>>, %arg16: memref<8x128xf32, #tpu.memory_space<vmem>>) attributes {dimension_semantics = [], scalar_prefetch = 0 : i64, scratch_operands = 0 : i64, tpu.core_type = #tpu.core_type<tc>} {
    %c0 = arith.constant 0 : index
    %c0_0 = arith.constant 0 : index
    %0 = vector.load %arg0[%c0, %c0_0] : memref<8x64xf32, #tpu.memory_space<vmem>>, vector<8x64xf32>
    %c0_1 = arith.constant 0 : index
    %c0_2 = arith.constant 0 : index
    %1 = vector.load %arg1[%c0_1, %c0_2] : memref<64x32xf32, #tpu.memory_space<vmem>>, vector<64x32xf32>
    %cst = arith.constant dense<0.000000e+00> : vector<8x32xf32>
    %2 = tpu.matmul %0, %1, %cst {dimension_numbers = #tpu.dot_dimension_numbers<[1], [0], [0], [1], [0, 0, 1, 1], [], []>} : vector<8x64xf32>, vector<64x32xf32>, vector<8x32xf32> -> vector<8x32xf32>
    %c0_3 = arith.constant 0 : index
    %c0_4 = arith.constant 0 : index
    %3 = vector.load %arg2[%c0_3, %c0_4] : memref<32x32xf32, #tpu.memory_space<vmem>>, vector<32x32xf32>
    %cst_5 = arith.constant dense<0.000000e+00> : vector<8x32xf32>
    %4 = tpu.matmul %2, %3, %cst_5 {dimension_numbers = #tpu.dot_dimension_numbers<[1], [0], [0], [1], [0, 0, 1, 1], [], []>} : vector<8x32xf32>, vector<32x32xf32>, vector<8x32xf32> -> vector<8x32xf32>
    %c0_6 = arith.constant 0 : index
    %c0_7 = arith.constant 0 : index
    %5 = vector.load %arg3[%c0_6, %c0_7] : memref<1x32xf32, #tpu.memory_space<vmem>>, vector<1x32xf32>
    %6 = vector.broadcast %5 : vector<1x32xf32> to vector<8x32xf32>
    %7 = arith.addf %4, %6 : vector<8x32xf32>
    %8 = math.tanh %7 : vector<8x32xf32>
    %c0_8 = arith.constant 0 : index
    %c0_9 = arith.constant 0 : index
    %9 = vector.load %arg4[%c0_8, %c0_9] : memref<32x256xf32, #tpu.memory_space<vmem>>, vector<32x256xf32>
    %cst_10 = arith.constant dense<0.000000e+00> : vector<8x256xf32>
    %10 = tpu.matmul %8, %9, %cst_10 {dimension_numbers = #tpu.dot_dimension_numbers<[1], [0], [0], [1], [0, 0, 1, 1], [], []>} : vector<8x32xf32>, vector<32x256xf32>, vector<8x256xf32> -> vector<8x256xf32>
    %c0_11 = arith.constant 0 : index
    %c0_12 = arith.constant 0 : index
    %11 = vector.load %arg6[%c0_11, %c0_12] : memref<1x256xf32, #tpu.memory_space<vmem>>, vector<1x256xf32>
    %12 = vector.broadcast %11 : vector<1x256xf32> to vector<8x256xf32>
    %13 = arith.addf %10, %12 : vector<8x256xf32>
    %c0_13 = arith.constant 0 : index
    %c0_14 = arith.constant 0 : index
    %14 = vector.load %arg7[%c0_13, %c0_14] : memref<1x256xf32, #tpu.memory_space<vmem>>, vector<1x256xf32>
    %15 = vector.broadcast %14 : vector<1x256xf32> to vector<8x256xf32>
    %16 = arith.mulf %13, %15 : vector<8x256xf32>
    %cst_15 = arith.constant 1.000000e+00 : f32
    %17 = vector.broadcast %cst_15 : f32 to vector<1x256xf32>
    %18 = arith.subf %17, %14 : vector<1x256xf32>
    %19 = vector.broadcast %18 : vector<1x256xf32> to vector<8x256xf32>
    %20 = arith.mulf %13, %19 : vector<8x256xf32>
    %c0_16 = arith.constant 0 : index
    %c0_17 = arith.constant 0 : index
    %21 = vector.load %arg5[%c0_16, %c0_17] : memref<64x256xf32, #tpu.memory_space<vmem>>, vector<64x256xf32>
    %cst_18 = arith.constant 0.000000e+00 : f32
    %22 = vector.broadcast %cst_18 : f32 to vector<1x64xf32>
    %cst_19 = arith.constant 0.000000e+00 : f32
    %23 = vector.broadcast %cst_19 : f32 to vector<1x64xf32>
    %24 = vector.extract_strided_slice %16 {offsets = [0, 0], sizes = [1, 256], strides = [1, 1]} : vector<8x256xf32> to vector<1x256xf32>
    %25 = vector.extract_strided_slice %20 {offsets = [7, 0], sizes = [1, 256], strides = [1, 1]} : vector<8x256xf32> to vector<1x256xf32>
    %26 = arith.addf %24, %25 : vector<1x256xf32>
    %cst_20 = arith.constant dense<0.000000e+00> : vector<1x256xf32>
    %27 = tpu.matmul %22, %21, %cst_20 {dimension_numbers = #tpu.dot_dimension_numbers<[1], [0], [0], [1], [0, 0, 1, 1], [], []>} : vector<1x64xf32>, vector<64x256xf32>, vector<1x256xf32> -> vector<1x256xf32>
    %28 = arith.addf %26, %27 : vector<1x256xf32>
    %29 = vector.extract_strided_slice %28 {offsets = [0, 0], sizes = [1, 64], strides = [1, 1]} : vector<1x256xf32> to vector<1x64xf32>
    %30 = arith.negf %29 : vector<1x64xf32>
    %31 = math.exp %30 : vector<1x64xf32>
    %cst_21 = arith.constant 1.000000e+00 : f32
    %32 = vector.broadcast %cst_21 : f32 to vector<1x64xf32>
    %33 = arith.addf %32, %31 : vector<1x64xf32>
    %34 = arith.divf %32, %33 : vector<1x64xf32>
    %35 = vector.extract_strided_slice %28 {offsets = [0, 64], sizes = [1, 64], strides = [1, 1]} : vector<1x256xf32> to vector<1x64xf32>
    %36 = arith.negf %35 : vector<1x64xf32>
    %37 = math.exp %36 : vector<1x64xf32>
    %cst_22 = arith.constant 1.000000e+00 : f32
    %38 = vector.broadcast %cst_22 : f32 to vector<1x64xf32>
    %39 = arith.addf %38, %37 : vector<1x64xf32>
    %40 = arith.divf %38, %39 : vector<1x64xf32>
    %41 = vector.extract_strided_slice %28 {offsets = [0, 128], sizes = [1, 64], strides = [1, 1]} : vector<1x256xf32> to vector<1x64xf32>
    %42 = math.tanh %41 : vector<1x64xf32>
    %43 = vector.extract_strided_slice %28 {offsets = [0, 192], sizes = [1, 64], strides = [1, 1]} : vector<1x256xf32> to vector<1x64xf32>
    %44 = arith.negf %43 : vector<1x64xf32>
    %45 = math.exp %44 : vector<1x64xf32>
    %cst_23 = arith.constant 1.000000e+00 : f32
    %46 = vector.broadcast %cst_23 : f32 to vector<1x64xf32>
    %47 = arith.addf %46, %45 : vector<1x64xf32>
    %48 = arith.divf %46, %47 : vector<1x64xf32>
    %49 = arith.mulf %40, %23 : vector<1x64xf32>
    %50 = arith.mulf %34, %42 : vector<1x64xf32>
    %51 = arith.addf %49, %50 : vector<1x64xf32>
    %52 = math.tanh %51 : vector<1x64xf32>
    %53 = arith.mulf %48, %52 : vector<1x64xf32>
    %54 = vector.extract_strided_slice %53 {offsets = [0, 0], sizes = [1, 32], strides = [1, 1]} : vector<1x64xf32> to vector<1x32xf32>
    %55 = vector.extract_strided_slice %53 {offsets = [0, 32], sizes = [1, 32], strides = [1, 1]} : vector<1x64xf32> to vector<1x32xf32>
    %56 = vector.extract_strided_slice %16 {offsets = [1, 0], sizes = [1, 256], strides = [1, 1]} : vector<8x256xf32> to vector<1x256xf32>
    %57 = vector.extract_strided_slice %20 {offsets = [6, 0], sizes = [1, 256], strides = [1, 1]} : vector<8x256xf32> to vector<1x256xf32>
    %58 = arith.addf %56, %57 : vector<1x256xf32>
    %cst_24 = arith.constant dense<0.000000e+00> : vector<1x256xf32>
    %59 = tpu.matmul %53, %21, %cst_24 {dimension_numbers = #tpu.dot_dimension_numbers<[1], [0], [0], [1], [0, 0, 1, 1], [], []>} : vector<1x64xf32>, vector<64x256xf32>, vector<1x256xf32> -> vector<1x256xf32>
    %60 = arith.addf %58, %59 : vector<1x256xf32>
    %61 = vector.extract_strided_slice %60 {offsets = [0, 0], sizes = [1, 64], strides = [1, 1]} : vector<1x256xf32> to vector<1x64xf32>
    %62 = arith.negf %61 : vector<1x64xf32>
    %63 = math.exp %62 : vector<1x64xf32>
    %cst_25 = arith.constant 1.000000e+00 : f32
    %64 = vector.broadcast %cst_25 : f32 to vector<1x64xf32>
    %65 = arith.addf %64, %63 : vector<1x64xf32>
    %66 = arith.divf %64, %65 : vector<1x64xf32>
    %67 = vector.extract_strided_slice %60 {offsets = [0, 64], sizes = [1, 64], strides = [1, 1]} : vector<1x256xf32> to vector<1x64xf32>
    %68 = arith.negf %67 : vector<1x64xf32>
    %69 = math.exp %68 : vector<1x64xf32>
    %cst_26 = arith.constant 1.000000e+00 : f32
    %70 = vector.broadcast %cst_26 : f32 to vector<1x64xf32>
    %71 = arith.addf %70, %69 : vector<1x64xf32>
    %72 = arith.divf %70, %71 : vector<1x64xf32>
    %73 = vector.extract_strided_slice %60 {offsets = [0, 128], sizes = [1, 64], strides = [1, 1]} : vector<1x256xf32> to vector<1x64xf32>
    %74 = math.tanh %73 : vector<1x64xf32>
    %75 = vector.extract_strided_slice %60 {offsets = [0, 192], sizes = [1, 64], strides = [1, 1]} : vector<1x256xf32> to vector<1x64xf32>
    %76 = arith.negf %75 : vector<1x64xf32>
    %77 = math.exp %76 : vector<1x64xf32>
    %cst_27 = arith.constant 1.000000e+00 : f32
    %78 = vector.broadcast %cst_27 : f32 to vector<1x64xf32>
    %79 = arith.addf %78, %77 : vector<1x64xf32>
    %80 = arith.divf %78, %79 : vector<1x64xf32>
    %81 = arith.mulf %72, %51 : vector<1x64xf32>
    %82 = arith.mulf %66, %74 : vector<1x64xf32>
    %83 = arith.addf %81, %82 : vector<1x64xf32>
    %84 = math.tanh %83 : vector<1x64xf32>
    %85 = arith.mulf %80, %84 : vector<1x64xf32>
    %86 = vector.extract_strided_slice %85 {offsets = [0, 0], sizes = [1, 32], strides = [1, 1]} : vector<1x64xf32> to vector<1x32xf32>
    %87 = vector.extract_strided_slice %85 {offsets = [0, 32], sizes = [1, 32], strides = [1, 1]} : vector<1x64xf32> to vector<1x32xf32>
    %88 = vector.extract_strided_slice %16 {offsets = [2, 0], sizes = [1, 256], strides = [1, 1]} : vector<8x256xf32> to vector<1x256xf32>
    %89 = vector.extract_strided_slice %20 {offsets = [5, 0], sizes = [1, 256], strides = [1, 1]} : vector<8x256xf32> to vector<1x256xf32>
    %90 = arith.addf %88, %89 : vector<1x256xf32>
    %cst_28 = arith.constant dense<0.000000e+00> : vector<1x256xf32>
    %91 = tpu.matmul %85, %21, %cst_28 {dimension_numbers = #tpu.dot_dimension_numbers<[1], [0], [0], [1], [0, 0, 1, 1], [], []>} : vector<1x64xf32>, vector<64x256xf32>, vector<1x256xf32> -> vector<1x256xf32>
    %92 = arith.addf %90, %91 : vector<1x256xf32>
    %93 = vector.extract_strided_slice %92 {offsets = [0, 0], sizes = [1, 64], strides = [1, 1]} : vector<1x256xf32> to vector<1x64xf32>
    %94 = arith.negf %93 : vector<1x64xf32>
    %95 = math.exp %94 : vector<1x64xf32>
    %cst_29 = arith.constant 1.000000e+00 : f32
    %96 = vector.broadcast %cst_29 : f32 to vector<1x64xf32>
    %97 = arith.addf %96, %95 : vector<1x64xf32>
    %98 = arith.divf %96, %97 : vector<1x64xf32>
    %99 = vector.extract_strided_slice %92 {offsets = [0, 64], sizes = [1, 64], strides = [1, 1]} : vector<1x256xf32> to vector<1x64xf32>
    %100 = arith.negf %99 : vector<1x64xf32>
    %101 = math.exp %100 : vector<1x64xf32>
    %cst_30 = arith.constant 1.000000e+00 : f32
    %102 = vector.broadcast %cst_30 : f32 to vector<1x64xf32>
    %103 = arith.addf %102, %101 : vector<1x64xf32>
    %104 = arith.divf %102, %103 : vector<1x64xf32>
    %105 = vector.extract_strided_slice %92 {offsets = [0, 128], sizes = [1, 64], strides = [1, 1]} : vector<1x256xf32> to vector<1x64xf32>
    %106 = math.tanh %105 : vector<1x64xf32>
    %107 = vector.extract_strided_slice %92 {offsets = [0, 192], sizes = [1, 64], strides = [1, 1]} : vector<1x256xf32> to vector<1x64xf32>
    %108 = arith.negf %107 : vector<1x64xf32>
    %109 = math.exp %108 : vector<1x64xf32>
    %cst_31 = arith.constant 1.000000e+00 : f32
    %110 = vector.broadcast %cst_31 : f32 to vector<1x64xf32>
    %111 = arith.addf %110, %109 : vector<1x64xf32>
    %112 = arith.divf %110, %111 : vector<1x64xf32>
    %113 = arith.mulf %104, %83 : vector<1x64xf32>
    %114 = arith.mulf %98, %106 : vector<1x64xf32>
    %115 = arith.addf %113, %114 : vector<1x64xf32>
    %116 = math.tanh %115 : vector<1x64xf32>
    %117 = arith.mulf %112, %116 : vector<1x64xf32>
    %118 = vector.extract_strided_slice %117 {offsets = [0, 0], sizes = [1, 32], strides = [1, 1]} : vector<1x64xf32> to vector<1x32xf32>
    %119 = vector.extract_strided_slice %117 {offsets = [0, 32], sizes = [1, 32], strides = [1, 1]} : vector<1x64xf32> to vector<1x32xf32>
    %120 = vector.extract_strided_slice %16 {offsets = [3, 0], sizes = [1, 256], strides = [1, 1]} : vector<8x256xf32> to vector<1x256xf32>
    %121 = vector.extract_strided_slice %20 {offsets = [4, 0], sizes = [1, 256], strides = [1, 1]} : vector<8x256xf32> to vector<1x256xf32>
    %122 = arith.addf %120, %121 : vector<1x256xf32>
    %cst_32 = arith.constant dense<0.000000e+00> : vector<1x256xf32>
    %123 = tpu.matmul %117, %21, %cst_32 {dimension_numbers = #tpu.dot_dimension_numbers<[1], [0], [0], [1], [0, 0, 1, 1], [], []>} : vector<1x64xf32>, vector<64x256xf32>, vector<1x256xf32> -> vector<1x256xf32>
    %124 = arith.addf %122, %123 : vector<1x256xf32>
    %125 = vector.extract_strided_slice %124 {offsets = [0, 0], sizes = [1, 64], strides = [1, 1]} : vector<1x256xf32> to vector<1x64xf32>
    %126 = arith.negf %125 : vector<1x64xf32>
    %127 = math.exp %126 : vector<1x64xf32>
    %cst_33 = arith.constant 1.000000e+00 : f32
    %128 = vector.broadcast %cst_33 : f32 to vector<1x64xf32>
    %129 = arith.addf %128, %127 : vector<1x64xf32>
    %130 = arith.divf %128, %129 : vector<1x64xf32>
    %131 = vector.extract_strided_slice %124 {offsets = [0, 64], sizes = [1, 64], strides = [1, 1]} : vector<1x256xf32> to vector<1x64xf32>
    %132 = arith.negf %131 : vector<1x64xf32>
    %133 = math.exp %132 : vector<1x64xf32>
    %cst_34 = arith.constant 1.000000e+00 : f32
    %134 = vector.broadcast %cst_34 : f32 to vector<1x64xf32>
    %135 = arith.addf %134, %133 : vector<1x64xf32>
    %136 = arith.divf %134, %135 : vector<1x64xf32>
    %137 = vector.extract_strided_slice %124 {offsets = [0, 128], sizes = [1, 64], strides = [1, 1]} : vector<1x256xf32> to vector<1x64xf32>
    %138 = math.tanh %137 : vector<1x64xf32>
    %139 = vector.extract_strided_slice %124 {offsets = [0, 192], sizes = [1, 64], strides = [1, 1]} : vector<1x256xf32> to vector<1x64xf32>
    %140 = arith.negf %139 : vector<1x64xf32>
    %141 = math.exp %140 : vector<1x64xf32>
    %cst_35 = arith.constant 1.000000e+00 : f32
    %142 = vector.broadcast %cst_35 : f32 to vector<1x64xf32>
    %143 = arith.addf %142, %141 : vector<1x64xf32>
    %144 = arith.divf %142, %143 : vector<1x64xf32>
    %145 = arith.mulf %136, %115 : vector<1x64xf32>
    %146 = arith.mulf %130, %138 : vector<1x64xf32>
    %147 = arith.addf %145, %146 : vector<1x64xf32>
    %148 = math.tanh %147 : vector<1x64xf32>
    %149 = arith.mulf %144, %148 : vector<1x64xf32>
    %150 = vector.extract_strided_slice %149 {offsets = [0, 0], sizes = [1, 32], strides = [1, 1]} : vector<1x64xf32> to vector<1x32xf32>
    %151 = vector.extract_strided_slice %149 {offsets = [0, 32], sizes = [1, 32], strides = [1, 1]} : vector<1x64xf32> to vector<1x32xf32>
    %152 = vector.extract_strided_slice %16 {offsets = [4, 0], sizes = [1, 256], strides = [1, 1]} : vector<8x256xf32> to vector<1x256xf32>
    %153 = vector.extract_strided_slice %20 {offsets = [3, 0], sizes = [1, 256], strides = [1, 1]} : vector<8x256xf32> to vector<1x256xf32>
    %154 = arith.addf %152, %153 : vector<1x256xf32>
    %cst_36 = arith.constant dense<0.000000e+00> : vector<1x256xf32>
    %155 = tpu.matmul %149, %21, %cst_36 {dimension_numbers = #tpu.dot_dimension_numbers<[1], [0], [0], [1], [0, 0, 1, 1], [], []>} : vector<1x64xf32>, vector<64x256xf32>, vector<1x256xf32> -> vector<1x256xf32>
    %156 = arith.addf %154, %155 : vector<1x256xf32>
    %157 = vector.extract_strided_slice %156 {offsets = [0, 0], sizes = [1, 64], strides = [1, 1]} : vector<1x256xf32> to vector<1x64xf32>
    %158 = arith.negf %157 : vector<1x64xf32>
    %159 = math.exp %158 : vector<1x64xf32>
    %cst_37 = arith.constant 1.000000e+00 : f32
    %160 = vector.broadcast %cst_37 : f32 to vector<1x64xf32>
    %161 = arith.addf %160, %159 : vector<1x64xf32>
    %162 = arith.divf %160, %161 : vector<1x64xf32>
    %163 = vector.extract_strided_slice %156 {offsets = [0, 64], sizes = [1, 64], strides = [1, 1]} : vector<1x256xf32> to vector<1x64xf32>
    %164 = arith.negf %163 : vector<1x64xf32>
    %165 = math.exp %164 : vector<1x64xf32>
    %cst_38 = arith.constant 1.000000e+00 : f32
    %166 = vector.broadcast %cst_38 : f32 to vector<1x64xf32>
    %167 = arith.addf %166, %165 : vector<1x64xf32>
    %168 = arith.divf %166, %167 : vector<1x64xf32>
    %169 = vector.extract_strided_slice %156 {offsets = [0, 128], sizes = [1, 64], strides = [1, 1]} : vector<1x256xf32> to vector<1x64xf32>
    %170 = math.tanh %169 : vector<1x64xf32>
    %171 = vector.extract_strided_slice %156 {offsets = [0, 192], sizes = [1, 64], strides = [1, 1]} : vector<1x256xf32> to vector<1x64xf32>
    %172 = arith.negf %171 : vector<1x64xf32>
    %173 = math.exp %172 : vector<1x64xf32>
    %cst_39 = arith.constant 1.000000e+00 : f32
    %174 = vector.broadcast %cst_39 : f32 to vector<1x64xf32>
    %175 = arith.addf %174, %173 : vector<1x64xf32>
    %176 = arith.divf %174, %175 : vector<1x64xf32>
    %177 = arith.mulf %168, %147 : vector<1x64xf32>
    %178 = arith.mulf %162, %170 : vector<1x64xf32>
    %179 = arith.addf %177, %178 : vector<1x64xf32>
    %180 = math.tanh %179 : vector<1x64xf32>
    %181 = arith.mulf %176, %180 : vector<1x64xf32>
    %182 = vector.extract_strided_slice %181 {offsets = [0, 0], sizes = [1, 32], strides = [1, 1]} : vector<1x64xf32> to vector<1x32xf32>
    %183 = vector.extract_strided_slice %181 {offsets = [0, 32], sizes = [1, 32], strides = [1, 1]} : vector<1x64xf32> to vector<1x32xf32>
    %184 = vector.extract_strided_slice %16 {offsets = [5, 0], sizes = [1, 256], strides = [1, 1]} : vector<8x256xf32> to vector<1x256xf32>
    %185 = vector.extract_strided_slice %20 {offsets = [2, 0], sizes = [1, 256], strides = [1, 1]} : vector<8x256xf32> to vector<1x256xf32>
    %186 = arith.addf %184, %185 : vector<1x256xf32>
    %cst_40 = arith.constant dense<0.000000e+00> : vector<1x256xf32>
    %187 = tpu.matmul %181, %21, %cst_40 {dimension_numbers = #tpu.dot_dimension_numbers<[1], [0], [0], [1], [0, 0, 1, 1], [], []>} : vector<1x64xf32>, vector<64x256xf32>, vector<1x256xf32> -> vector<1x256xf32>
    %188 = arith.addf %186, %187 : vector<1x256xf32>
    %189 = vector.extract_strided_slice %188 {offsets = [0, 0], sizes = [1, 64], strides = [1, 1]} : vector<1x256xf32> to vector<1x64xf32>
    %190 = arith.negf %189 : vector<1x64xf32>
    %191 = math.exp %190 : vector<1x64xf32>
    %cst_41 = arith.constant 1.000000e+00 : f32
    %192 = vector.broadcast %cst_41 : f32 to vector<1x64xf32>
    %193 = arith.addf %192, %191 : vector<1x64xf32>
    %194 = arith.divf %192, %193 : vector<1x64xf32>
    %195 = vector.extract_strided_slice %188 {offsets = [0, 64], sizes = [1, 64], strides = [1, 1]} : vector<1x256xf32> to vector<1x64xf32>
    %196 = arith.negf %195 : vector<1x64xf32>
    %197 = math.exp %196 : vector<1x64xf32>
    %cst_42 = arith.constant 1.000000e+00 : f32
    %198 = vector.broadcast %cst_42 : f32 to vector<1x64xf32>
    %199 = arith.addf %198, %197 : vector<1x64xf32>
    %200 = arith.divf %198, %199 : vector<1x64xf32>
    %201 = vector.extract_strided_slice %188 {offsets = [0, 128], sizes = [1, 64], strides = [1, 1]} : vector<1x256xf32> to vector<1x64xf32>
    %202 = math.tanh %201 : vector<1x64xf32>
    %203 = vector.extract_strided_slice %188 {offsets = [0, 192], sizes = [1, 64], strides = [1, 1]} : vector<1x256xf32> to vector<1x64xf32>
    %204 = arith.negf %203 : vector<1x64xf32>
    %205 = math.exp %204 : vector<1x64xf32>
    %cst_43 = arith.constant 1.000000e+00 : f32
    %206 = vector.broadcast %cst_43 : f32 to vector<1x64xf32>
    %207 = arith.addf %206, %205 : vector<1x64xf32>
    %208 = arith.divf %206, %207 : vector<1x64xf32>
    %209 = arith.mulf %200, %179 : vector<1x64xf32>
    %210 = arith.mulf %194, %202 : vector<1x64xf32>
    %211 = arith.addf %209, %210 : vector<1x64xf32>
    %212 = math.tanh %211 : vector<1x64xf32>
    %213 = arith.mulf %208, %212 : vector<1x64xf32>
    %214 = vector.extract_strided_slice %213 {offsets = [0, 0], sizes = [1, 32], strides = [1, 1]} : vector<1x64xf32> to vector<1x32xf32>
    %215 = vector.extract_strided_slice %213 {offsets = [0, 32], sizes = [1, 32], strides = [1, 1]} : vector<1x64xf32> to vector<1x32xf32>
    %216 = vector.extract_strided_slice %16 {offsets = [6, 0], sizes = [1, 256], strides = [1, 1]} : vector<8x256xf32> to vector<1x256xf32>
    %217 = vector.extract_strided_slice %20 {offsets = [1, 0], sizes = [1, 256], strides = [1, 1]} : vector<8x256xf32> to vector<1x256xf32>
    %218 = arith.addf %216, %217 : vector<1x256xf32>
    %cst_44 = arith.constant dense<0.000000e+00> : vector<1x256xf32>
    %219 = tpu.matmul %213, %21, %cst_44 {dimension_numbers = #tpu.dot_dimension_numbers<[1], [0], [0], [1], [0, 0, 1, 1], [], []>} : vector<1x64xf32>, vector<64x256xf32>, vector<1x256xf32> -> vector<1x256xf32>
    %220 = arith.addf %218, %219 : vector<1x256xf32>
    %221 = vector.extract_strided_slice %220 {offsets = [0, 0], sizes = [1, 64], strides = [1, 1]} : vector<1x256xf32> to vector<1x64xf32>
    %222 = arith.negf %221 : vector<1x64xf32>
    %223 = math.exp %222 : vector<1x64xf32>
    %cst_45 = arith.constant 1.000000e+00 : f32
    %224 = vector.broadcast %cst_45 : f32 to vector<1x64xf32>
    %225 = arith.addf %224, %223 : vector<1x64xf32>
    %226 = arith.divf %224, %225 : vector<1x64xf32>
    %227 = vector.extract_strided_slice %220 {offsets = [0, 64], sizes = [1, 64], strides = [1, 1]} : vector<1x256xf32> to vector<1x64xf32>
    %228 = arith.negf %227 : vector<1x64xf32>
    %229 = math.exp %228 : vector<1x64xf32>
    %cst_46 = arith.constant 1.000000e+00 : f32
    %230 = vector.broadcast %cst_46 : f32 to vector<1x64xf32>
    %231 = arith.addf %230, %229 : vector<1x64xf32>
    %232 = arith.divf %230, %231 : vector<1x64xf32>
    %233 = vector.extract_strided_slice %220 {offsets = [0, 128], sizes = [1, 64], strides = [1, 1]} : vector<1x256xf32> to vector<1x64xf32>
    %234 = math.tanh %233 : vector<1x64xf32>
    %235 = vector.extract_strided_slice %220 {offsets = [0, 192], sizes = [1, 64], strides = [1, 1]} : vector<1x256xf32> to vector<1x64xf32>
    %236 = arith.negf %235 : vector<1x64xf32>
    %237 = math.exp %236 : vector<1x64xf32>
    %cst_47 = arith.constant 1.000000e+00 : f32
    %238 = vector.broadcast %cst_47 : f32 to vector<1x64xf32>
    %239 = arith.addf %238, %237 : vector<1x64xf32>
    %240 = arith.divf %238, %239 : vector<1x64xf32>
    %241 = arith.mulf %232, %211 : vector<1x64xf32>
    %242 = arith.mulf %226, %234 : vector<1x64xf32>
    %243 = arith.addf %241, %242 : vector<1x64xf32>
    %244 = math.tanh %243 : vector<1x64xf32>
    %245 = arith.mulf %240, %244 : vector<1x64xf32>
    %246 = vector.extract_strided_slice %245 {offsets = [0, 0], sizes = [1, 32], strides = [1, 1]} : vector<1x64xf32> to vector<1x32xf32>
    %247 = vector.extract_strided_slice %245 {offsets = [0, 32], sizes = [1, 32], strides = [1, 1]} : vector<1x64xf32> to vector<1x32xf32>
    %248 = vector.extract_strided_slice %16 {offsets = [7, 0], sizes = [1, 256], strides = [1, 1]} : vector<8x256xf32> to vector<1x256xf32>
    %249 = vector.extract_strided_slice %20 {offsets = [0, 0], sizes = [1, 256], strides = [1, 1]} : vector<8x256xf32> to vector<1x256xf32>
    %250 = arith.addf %248, %249 : vector<1x256xf32>
    %cst_48 = arith.constant dense<0.000000e+00> : vector<1x256xf32>
    %251 = tpu.matmul %245, %21, %cst_48 {dimension_numbers = #tpu.dot_dimension_numbers<[1], [0], [0], [1], [0, 0, 1, 1], [], []>} : vector<1x64xf32>, vector<64x256xf32>, vector<1x256xf32> -> vector<1x256xf32>
    %252 = arith.addf %250, %251 : vector<1x256xf32>
    %253 = vector.extract_strided_slice %252 {offsets = [0, 0], sizes = [1, 64], strides = [1, 1]} : vector<1x256xf32> to vector<1x64xf32>
    %254 = arith.negf %253 : vector<1x64xf32>
    %255 = math.exp %254 : vector<1x64xf32>
    %cst_49 = arith.constant 1.000000e+00 : f32
    %256 = vector.broadcast %cst_49 : f32 to vector<1x64xf32>
    %257 = arith.addf %256, %255 : vector<1x64xf32>
    %258 = arith.divf %256, %257 : vector<1x64xf32>
    %259 = vector.extract_strided_slice %252 {offsets = [0, 64], sizes = [1, 64], strides = [1, 1]} : vector<1x256xf32> to vector<1x64xf32>
    %260 = arith.negf %259 : vector<1x64xf32>
    %261 = math.exp %260 : vector<1x64xf32>
    %cst_50 = arith.constant 1.000000e+00 : f32
    %262 = vector.broadcast %cst_50 : f32 to vector<1x64xf32>
    %263 = arith.addf %262, %261 : vector<1x64xf32>
    %264 = arith.divf %262, %263 : vector<1x64xf32>
    %265 = vector.extract_strided_slice %252 {offsets = [0, 128], sizes = [1, 64], strides = [1, 1]} : vector<1x256xf32> to vector<1x64xf32>
    %266 = math.tanh %265 : vector<1x64xf32>
    %267 = vector.extract_strided_slice %252 {offsets = [0, 192], sizes = [1, 64], strides = [1, 1]} : vector<1x256xf32> to vector<1x64xf32>
    %268 = arith.negf %267 : vector<1x64xf32>
    %269 = math.exp %268 : vector<1x64xf32>
    %cst_51 = arith.constant 1.000000e+00 : f32
    %270 = vector.broadcast %cst_51 : f32 to vector<1x64xf32>
    %271 = arith.addf %270, %269 : vector<1x64xf32>
    %272 = arith.divf %270, %271 : vector<1x64xf32>
    %273 = arith.mulf %264, %243 : vector<1x64xf32>
    %274 = arith.mulf %258, %266 : vector<1x64xf32>
    %275 = arith.addf %273, %274 : vector<1x64xf32>
    %276 = math.tanh %275 : vector<1x64xf32>
    %277 = arith.mulf %272, %276 : vector<1x64xf32>
    %278 = vector.extract_strided_slice %277 {offsets = [0, 0], sizes = [1, 32], strides = [1, 1]} : vector<1x64xf32> to vector<1x32xf32>
    %279 = vector.extract_strided_slice %277 {offsets = [0, 32], sizes = [1, 32], strides = [1, 1]} : vector<1x64xf32> to vector<1x32xf32>
    %280 = tpu.concatenate %54, %86, %118, %150, %182, %214, %246, %278 in 0 : vector<1x32xf32>, vector<1x32xf32>, vector<1x32xf32>, vector<1x32xf32>, vector<1x32xf32>, vector<1x32xf32>, vector<1x32xf32>, vector<1x32xf32> -> vector<8x32xf32>
    %281 = tpu.concatenate %279, %247, %215, %183, %151, %119, %87, %55 in 0 : vector<1x32xf32>, vector<1x32xf32>, vector<1x32xf32>, vector<1x32xf32>, vector<1x32xf32>, vector<1x32xf32>, vector<1x32xf32>, vector<1x32xf32> -> vector<8x32xf32>
    %282 = tpu.concatenate %280, %281, %8 in 1 : vector<8x32xf32>, vector<8x32xf32>, vector<8x32xf32> -> vector<8x96xf32>
    %c0_52 = arith.constant 0 : index
    %c0_53 = arith.constant 0 : index
    %283 = vector.load %arg8[%c0_52, %c0_53] : memref<96x384xf32, #tpu.memory_space<vmem>>, vector<96x384xf32>
    %cst_54 = arith.constant dense<0.000000e+00> : vector<8x384xf32>
    %284 = tpu.matmul %282, %283, %cst_54 {dimension_numbers = #tpu.dot_dimension_numbers<[1], [0], [0], [1], [0, 0, 1, 1], [], []>} : vector<8x96xf32>, vector<96x384xf32>, vector<8x384xf32> -> vector<8x384xf32>
    %c0_55 = arith.constant 0 : index
    %c0_56 = arith.constant 0 : index
    %285 = vector.load %arg9[%c0_55, %c0_56] : memref<1x384xf32, #tpu.memory_space<vmem>>, vector<1x384xf32>
    %286 = vector.broadcast %285 : vector<1x384xf32> to vector<8x384xf32>
    %287 = arith.addf %284, %286 : vector<8x384xf32>
    %288 = vector.extract_strided_slice %287 {offsets = [0, 0], sizes = [8, 128], strides = [1, 1]} : vector<8x384xf32> to vector<8x128xf32>
    %289 = vector.extract_strided_slice %287 {offsets = [0, 128], sizes = [8, 128], strides = [1, 1]} : vector<8x384xf32> to vector<8x128xf32>
    %290 = vector.extract_strided_slice %287 {offsets = [0, 256], sizes = [8, 128], strides = [1, 1]} : vector<8x384xf32> to vector<8x128xf32>
    %291 = vector.extract_strided_slice %288 {offsets = [0, 0], sizes = [8, 32], strides = [1, 1]} : vector<8x128xf32> to vector<8x32xf32>
    %292 = vector.extract_strided_slice %289 {offsets = [0, 0], sizes = [8, 32], strides = [1, 1]} : vector<8x128xf32> to vector<8x32xf32>
    %293 = vector.extract_strided_slice %290 {offsets = [0, 0], sizes = [8, 32], strides = [1, 1]} : vector<8x128xf32> to vector<8x32xf32>
    %cst_57 = arith.constant dense<0.000000e+00> : vector<8x8xf32>
    %294 = tpu.matmul %291, %292, %cst_57 {dimension_numbers = #tpu.dot_dimension_numbers<[1], [1], [0], [0], [0, 0, 1, 0], [], []>} : vector<8x32xf32>, vector<8x32xf32>, vector<8x8xf32> -> vector<8x8xf32>
    %cst_58 = arith.constant dense<0xFF800000> : vector<8xf32>
    %295 = vector.multi_reduction <maximumf>, %294, %cst_58 [1] : vector<8x8xf32> to vector<8xf32>
    %296 = vector.shape_cast %295 : vector<8xf32> to vector<8x1xf32>
    %297 = vector.broadcast %296 : vector<8x1xf32> to vector<8x8xf32>
    %298 = arith.subf %294, %297 : vector<8x8xf32>
    %299 = math.exp %298 : vector<8x8xf32>
    %cst_59 = arith.constant dense<0.000000e+00> : vector<8xf32>
    %300 = vector.multi_reduction <add>, %299, %cst_59 [1] : vector<8x8xf32> to vector<8xf32>
    %301 = vector.shape_cast %300 : vector<8xf32> to vector<8x1xf32>
    %302 = tpu.reciprocal %301 {approx = true} : vector<8x1xf32> -> vector<8x1xf32>
    %303 = vector.broadcast %302 : vector<8x1xf32> to vector<8x8xf32>
    %304 = arith.mulf %299, %303 : vector<8x8xf32>
    %cst_60 = arith.constant dense<0.000000e+00> : vector<8x32xf32>
    %305 = tpu.matmul %304, %293, %cst_60 {dimension_numbers = #tpu.dot_dimension_numbers<[1], [0], [0], [1], [0, 0, 1, 1], [], []>} : vector<8x8xf32>, vector<8x32xf32>, vector<8x32xf32> -> vector<8x32xf32>
    %306 = vector.extract_strided_slice %288 {offsets = [0, 32], sizes = [8, 32], strides = [1, 1]} : vector<8x128xf32> to vector<8x32xf32>
    %307 = vector.extract_strided_slice %289 {offsets = [0, 32], sizes = [8, 32], strides = [1, 1]} : vector<8x128xf32> to vector<8x32xf32>
    %308 = vector.extract_strided_slice %290 {offsets = [0, 32], sizes = [8, 32], strides = [1, 1]} : vector<8x128xf32> to vector<8x32xf32>
    %cst_61 = arith.constant dense<0.000000e+00> : vector<8x8xf32>
    %309 = tpu.matmul %306, %307, %cst_61 {dimension_numbers = #tpu.dot_dimension_numbers<[1], [1], [0], [0], [0, 0, 1, 0], [], []>} : vector<8x32xf32>, vector<8x32xf32>, vector<8x8xf32> -> vector<8x8xf32>
    %cst_62 = arith.constant dense<0xFF800000> : vector<8xf32>
    %310 = vector.multi_reduction <maximumf>, %309, %cst_62 [1] : vector<8x8xf32> to vector<8xf32>
    %311 = vector.shape_cast %310 : vector<8xf32> to vector<8x1xf32>
    %312 = vector.broadcast %311 : vector<8x1xf32> to vector<8x8xf32>
    %313 = arith.subf %309, %312 : vector<8x8xf32>
    %314 = math.exp %313 : vector<8x8xf32>
    %cst_63 = arith.constant dense<0.000000e+00> : vector<8xf32>
    %315 = vector.multi_reduction <add>, %314, %cst_63 [1] : vector<8x8xf32> to vector<8xf32>
    %316 = vector.shape_cast %315 : vector<8xf32> to vector<8x1xf32>
    %317 = tpu.reciprocal %316 {approx = true} : vector<8x1xf32> -> vector<8x1xf32>
    %318 = vector.broadcast %317 : vector<8x1xf32> to vector<8x8xf32>
    %319 = arith.mulf %314, %318 : vector<8x8xf32>
    %cst_64 = arith.constant dense<0.000000e+00> : vector<8x32xf32>
    %320 = tpu.matmul %319, %308, %cst_64 {dimension_numbers = #tpu.dot_dimension_numbers<[1], [0], [0], [1], [0, 0, 1, 1], [], []>} : vector<8x8xf32>, vector<8x32xf32>, vector<8x32xf32> -> vector<8x32xf32>
    %321 = vector.extract_strided_slice %288 {offsets = [0, 64], sizes = [8, 32], strides = [1, 1]} : vector<8x128xf32> to vector<8x32xf32>
    %322 = vector.extract_strided_slice %289 {offsets = [0, 64], sizes = [8, 32], strides = [1, 1]} : vector<8x128xf32> to vector<8x32xf32>
    %323 = vector.extract_strided_slice %290 {offsets = [0, 64], sizes = [8, 32], strides = [1, 1]} : vector<8x128xf32> to vector<8x32xf32>
    %cst_65 = arith.constant dense<0.000000e+00> : vector<8x8xf32>
    %324 = tpu.matmul %321, %322, %cst_65 {dimension_numbers = #tpu.dot_dimension_numbers<[1], [1], [0], [0], [0, 0, 1, 0], [], []>} : vector<8x32xf32>, vector<8x32xf32>, vector<8x8xf32> -> vector<8x8xf32>
    %cst_66 = arith.constant dense<0xFF800000> : vector<8xf32>
    %325 = vector.multi_reduction <maximumf>, %324, %cst_66 [1] : vector<8x8xf32> to vector<8xf32>
    %326 = vector.shape_cast %325 : vector<8xf32> to vector<8x1xf32>
    %327 = vector.broadcast %326 : vector<8x1xf32> to vector<8x8xf32>
    %328 = arith.subf %324, %327 : vector<8x8xf32>
    %329 = math.exp %328 : vector<8x8xf32>
    %cst_67 = arith.constant dense<0.000000e+00> : vector<8xf32>
    %330 = vector.multi_reduction <add>, %329, %cst_67 [1] : vector<8x8xf32> to vector<8xf32>
    %331 = vector.shape_cast %330 : vector<8xf32> to vector<8x1xf32>
    %332 = tpu.reciprocal %331 {approx = true} : vector<8x1xf32> -> vector<8x1xf32>
    %333 = vector.broadcast %332 : vector<8x1xf32> to vector<8x8xf32>
    %334 = arith.mulf %329, %333 : vector<8x8xf32>
    %cst_68 = arith.constant dense<0.000000e+00> : vector<8x32xf32>
    %335 = tpu.matmul %334, %323, %cst_68 {dimension_numbers = #tpu.dot_dimension_numbers<[1], [0], [0], [1], [0, 0, 1, 1], [], []>} : vector<8x8xf32>, vector<8x32xf32>, vector<8x32xf32> -> vector<8x32xf32>
    %336 = vector.extract_strided_slice %288 {offsets = [0, 96], sizes = [8, 32], strides = [1, 1]} : vector<8x128xf32> to vector<8x32xf32>
    %337 = vector.extract_strided_slice %289 {offsets = [0, 96], sizes = [8, 32], strides = [1, 1]} : vector<8x128xf32> to vector<8x32xf32>
    %338 = vector.extract_strided_slice %290 {offsets = [0, 96], sizes = [8, 32], strides = [1, 1]} : vector<8x128xf32> to vector<8x32xf32>
    %cst_69 = arith.constant dense<0.000000e+00> : vector<8x8xf32>
    %339 = tpu.matmul %336, %337, %cst_69 {dimension_numbers = #tpu.dot_dimension_numbers<[1], [1], [0], [0], [0, 0, 1, 0], [], []>} : vector<8x32xf32>, vector<8x32xf32>, vector<8x8xf32> -> vector<8x8xf32>
    %cst_70 = arith.constant dense<0xFF800000> : vector<8xf32>
    %340 = vector.multi_reduction <maximumf>, %339, %cst_70 [1] : vector<8x8xf32> to vector<8xf32>
    %341 = vector.shape_cast %340 : vector<8xf32> to vector<8x1xf32>
    %342 = vector.broadcast %341 : vector<8x1xf32> to vector<8x8xf32>
    %343 = arith.subf %339, %342 : vector<8x8xf32>
    %344 = math.exp %343 : vector<8x8xf32>
    %cst_71 = arith.constant dense<0.000000e+00> : vector<8xf32>
    %345 = vector.multi_reduction <add>, %344, %cst_71 [1] : vector<8x8xf32> to vector<8xf32>
    %346 = vector.shape_cast %345 : vector<8xf32> to vector<8x1xf32>
    %347 = tpu.reciprocal %346 {approx = true} : vector<8x1xf32> -> vector<8x1xf32>
    %348 = vector.broadcast %347 : vector<8x1xf32> to vector<8x8xf32>
    %349 = arith.mulf %344, %348 : vector<8x8xf32>
    %cst_72 = arith.constant dense<0.000000e+00> : vector<8x32xf32>
    %350 = tpu.matmul %349, %338, %cst_72 {dimension_numbers = #tpu.dot_dimension_numbers<[1], [0], [0], [1], [0, 0, 1, 1], [], []>} : vector<8x8xf32>, vector<8x32xf32>, vector<8x32xf32> -> vector<8x32xf32>
    %351 = tpu.concatenate %305, %320, %335, %350 in 1 : vector<8x32xf32>, vector<8x32xf32>, vector<8x32xf32>, vector<8x32xf32> -> vector<8x128xf32>
    %c0_73 = arith.constant 0 : index
    %c0_74 = arith.constant 0 : index
    %352 = vector.load %arg10[%c0_73, %c0_74] : memref<128x96xf32, #tpu.memory_space<vmem>>, vector<128x96xf32>
    %cst_75 = arith.constant dense<0.000000e+00> : vector<8x96xf32>
    %353 = tpu.matmul %351, %352, %cst_75 {dimension_numbers = #tpu.dot_dimension_numbers<[1], [0], [0], [1], [0, 0, 1, 1], [], []>} : vector<8x128xf32>, vector<128x96xf32>, vector<8x96xf32> -> vector<8x96xf32>
    %c0_76 = arith.constant 0 : index
    %c0_77 = arith.constant 0 : index
    %354 = vector.load %arg11[%c0_76, %c0_77] : memref<1x96xf32, #tpu.memory_space<vmem>>, vector<1x96xf32>
    %355 = vector.broadcast %354 : vector<1x96xf32> to vector<8x96xf32>
    %356 = arith.addf %353, %355 : vector<8x96xf32>
    %c0_78 = arith.constant 0 : index
    %c0_79 = arith.constant 0 : index
    %357 = vector.load %arg12[%c0_78, %c0_79] : memref<96x192xf32, #tpu.memory_space<vmem>>, vector<96x192xf32>
    %cst_80 = arith.constant dense<0.000000e+00> : vector<8x192xf32>
    %358 = tpu.matmul %356, %357, %cst_80 {dimension_numbers = #tpu.dot_dimension_numbers<[1], [0], [0], [1], [0, 0, 1, 1], [], []>} : vector<8x96xf32>, vector<96x192xf32>, vector<8x192xf32> -> vector<8x192xf32>
    %c0_81 = arith.constant 0 : index
    %c0_82 = arith.constant 0 : index
    %359 = vector.load %arg13[%c0_81, %c0_82] : memref<1x192xf32, #tpu.memory_space<vmem>>, vector<1x192xf32>
    %360 = vector.broadcast %359 : vector<1x192xf32> to vector<8x192xf32>
    %361 = arith.addf %358, %360 : vector<8x192xf32>
    %cst_83 = arith.constant 0.000000e+00 : f32
    %362 = vector.broadcast %cst_83 : f32 to vector<8x192xf32>
    %363 = arith.maximumf %361, %362 : vector<8x192xf32>
    %c0_84 = arith.constant 0 : index
    %c0_85 = arith.constant 0 : index
    %364 = vector.load %arg14[%c0_84, %c0_85] : memref<192x128xf32, #tpu.memory_space<vmem>>, vector<192x128xf32>
    %cst_86 = arith.constant dense<0.000000e+00> : vector<8x128xf32>
    %365 = tpu.matmul %363, %364, %cst_86 {dimension_numbers = #tpu.dot_dimension_numbers<[1], [0], [0], [1], [0, 0, 1, 1], [], []>} : vector<8x192xf32>, vector<192x128xf32>, vector<8x128xf32> -> vector<8x128xf32>
    %c0_87 = arith.constant 0 : index
    %c0_88 = arith.constant 0 : index
    %366 = vector.load %arg15[%c0_87, %c0_88] : memref<1x128xf32, #tpu.memory_space<vmem>>, vector<1x128xf32>
    %367 = vector.broadcast %366 : vector<1x128xf32> to vector<8x128xf32>
    %368 = arith.addf %365, %367 : vector<8x128xf32>
    %c0_89 = arith.constant 0 : index
    %c0_90 = arith.constant 0 : index
    %369 = vector.load %arg16[%c0_89, %c0_90] : memref<8x128xf32, #tpu.memory_space<vmem>>, vector<8x128xf32>
    tpu.vector_store %arg16[%c0_89, %c0_90], %368 {strides = array<i32>} : memref<8x128xf32, #tpu.memory_space<vmem>>, vector<8x128xf32>,
    return
  }
}

</mosaic_0001>

<bundles_post_ra>
// kernel: forward.1
= control target key start
LH: loop header
LB: loop body
LE: loop exit
PB: predicated region body
PF: predicated region fallthrough
CT: control target
= control target key end

     0   :  { %s2753_s0 = inlined_call_operand.vmem [shape: f32[8,64], index: 0, kind: input, shape index: {}]   ;;  %s2754_s1 = inlined_call_operand.vmem [shape: f32[64,32], index: 1, kind: input, shape index: {}]   ;;  %s2755_s2 = inlined_call_operand.hbm [shape: f32[32,32], index: 2, kind: input, shape index: {}]   ;;  %s2756_s3 = inlined_call_operand.vmem [shape: f32[1,32], index: 3, kind: input, shape index: {}]   ;;  %s2757_s4 = inlined_call_operand.hbm [shape: f32[32,256], index: 4, kind: input, shape index: {}]   ;;  %s2758_s5 = inlined_call_operand.hbm [shape: f32[64,256], index: 5, kind: input, shape index: {}]   ;;  %s2759_s6 = inlined_call_operand.vmem [shape: f32[1,256], index: 6, kind: input, shape index: {}]   ;;  %s2760_s7 = inlined_call_operand.vmem [shape: f32[1,256], index: 7, kind: input, shape index: {}]   ;;  %s2761_s8 = inlined_call_operand.vmem [shape: f32[96,384], index: 8, kind: input, shape index: {}]   ;;  %s2762_s9 = inlined_call_operand.vmem [shape: f32[1,384], index: 9, kind: input, shape index: {}]   ;;  %s2763_s10 = inlined_call_operand.vmem [shape: f32[128,96], index: 10, kind: input, shape index: {}]   ;;  %s2764_s11 = inlined_call_operand.vmem [shape: f32[1,96], index: 11, kind: input, shape index: {}]   ;;  %s2765_s12 = inlined_call_operand.hbm [shape: f32[96,192], index: 12, kind: input, shape index: {}]   ;;  %s2766_s13 = inlined_call_operand.vmem [shape: f32[1,192], index: 13, kind: input, shape index: {}]   ;;  %s2767_s14 = inlined_call_operand.hbm [shape: f32[192,128], index: 14, kind: input, shape index: {}]   ;;  %s2768_s15 = inlined_call_operand.vmem [shape: f32[1,128], index: 15, kind: input, shape index: {}]   ;;  %s2769_s16 = inlined_call_operand.vmem [shape: f32[8,128], index: 16, kind: output, shape index: {}]  }
   0x1   :  { %2770 = sst [smem:[#allocation13_spill]] %s2753_s0 }
   0x2   :  { %2771 = sst [smem:[#allocation14_spill]] %s2769_s16 }
   0x3   :  { %21 = vsyncpa [#allocation3], 0 }
   0x4   :  { %22 = vsyncpa [#allocation5], 0  ;;  %s47_s23 = sshll.u32 %s2757_s4, 4  ;;  %s48_s23 = int_to_ptr.hbm [resolvable:$true] %s47_s23 }
   0x5   :  { %23 = vsyncpa [#allocation8], 0  ;;  %s2072_s24 = smov [#allocation4]   ;;  %s85_s28 = sshll.u32 %s2765_s12, 4  ;;  %s86_s28 = int_to_ptr.hbm [resolvable:$true] %s85_s28 }
   0x6   :  { %s49_s25 = sshll.u32 %s2072_s24, 4  ;;  %s2073_s29 = smov 256   ;;  %s50_s25 = int_to_ptr.vmem [resolvable:$true] %s49_s25 }
   0x7   :  { %s2074_s30 = smov 16   ;;  %s2075_s0 = smov [#allocation7]  }
   0x8   :  { %55 = dma.hbm_to_vmem [thread:$0]  %s48_s23, 1024, %s50_s25, [#allocation5], %s2073_s29, %s2073_s29, %s2074_s30  }
   0x9   :  { %s87_s17 = sshll.u32 %s2075_s0, 4  ;;  %s32_s20 = sshll.u32 %s2755_s2, 4  ;;  %s88_s17 = int_to_ptr.vmem [resolvable:$true] %s87_s17  ;;  %s33_s20 = int_to_ptr.hbm [resolvable:$true] %s32_s20 }
   0xa   :  { %93 = dma.hbm_to_vmem [thread:$0]  %s86_s28, 3072, %s88_s17, [#allocation8], %s2073_s29, %s2073_s29, %s2074_s30  }
   0xb   :  { %s2076_s4 = smov [#allocation2]   ;;  %s60_s12 = sshll.u32 %s2758_s5, 4  ;;  %s61_s12 = int_to_ptr.hbm [resolvable:$true] %s60_s12 }
   0xc   :  { %s34_s21 = sshll.u32 %s2076_s4, 4  ;;  %s2077_s26 = smov 128   ;;  %s35_s21 = int_to_ptr.vmem [resolvable:$true] %s34_s21 }
   0xd   :  { %s2078_s27 = smov 8   ;;  %s2079_s23 = smov [#allocation6]  }
   0xe   :  { %40 = dma.hbm_to_vmem [thread:$0]  %s33_s20, 512, %s35_s21, [#allocation3], %s2077_s26, %s2077_s26, %s2078_s27  }
   0xf   :  { %s62_s25 = sshll.u32 %s2079_s23, 4  ;;  %s100_s2 = sshll.u32 %s2767_s14, 4  ;;  %s63_s25 = int_to_ptr.vmem [resolvable:$true] %s62_s25  ;;  %s101_s2 = int_to_ptr.hbm [resolvable:$true] %s100_s2 }
  0x10   :  { %68 = dma.hbm_to_vmem [thread:$0]  %s61_s12, 2048, %s63_s25, [#allocation5], %s2073_s29, %s2073_s29, %s2074_s30  }
  0x11   :  { %s2080_s28 = smov [#allocation9]  }
  0x12   :  { %s102_s17 = sshll.u32 %s2080_s28, 4  ;;  %s103_s17 = int_to_ptr.vmem [resolvable:$true] %s102_s17 }
  0x13   :  { %108 = dma.hbm_to_vmem [thread:$0]  %s101_s2, 3072, %s103_s17, [#allocation8], %s2077_s26, %s2077_s26, %s2078_s27  }
  0x14   :  { %2066 = dma.done.wait [#allocation3], 512  }
  0x15   :  { %2067 = vsyncadd [#allocation3], 4294966784 }
  0x16   :  { %2068 = dma.done.wait [#allocation5], 3072  }
  0x17   :  { %2069 = vsyncadd [#allocation5], 4294964224 }
  0x18   :  { %2070 = dma.done.wait [#allocation8], 6144  }
  0x19   :  { %2071 = vsyncadd [#allocation8], 4294961152  ;;  %v139_v0 = vld [vmem:[%s2754_s1 + $0x38] sm:$0xff]  ;;  %v138_v1 = vld [vmem:[%s2754_s1 + $0x30] sm:$0xff]  ;;  %s2772_s2 = sld [smem:[#allocation13_spill]]  ;;  %vm140_vm0 = vcmask 523264  }
  0x1a   :  { %152 = vmatpush.msra.mxu0 %v139_v0  ;;  %v137_v2 = vld [vmem:[%s2754_s1 + $0x28] sm:$0xff]  ;;  %v136_v3 = vld [vmem:[%s2754_s1 + $0x20] sm:$0xff]  ;;  %v167_v4 = vld [vmem:[#allocation2 + $0x18] sm:$0xff]  ;;  %vm172_vm1 = vcmask 261120   ;;  %v2081_v38 = vmov 0.0   ;;  %s2773_s26 = sld [smem:[#allocation14_spill]] }
  0x1b   :  { %v166_v5 = vld [vmem:[#allocation2 + $0x10] sm:$0xff]  ;;  %188 = vmatpush.msra.mxu1 %v167_v4  ;;  %v165_v6 = vld [vmem:[#allocation2 + $0x8] sm:$0xff]  ;;  %v135_v7 = vld [vmem:[%s2754_s1 + $0x18] sm:$0xff] }
  0x1c   :  { %153 = vmatpush.msra.mxu0 %v138_v1  ;;  %v134_v8 = vld [vmem:[%s2754_s1 + $0x10] sm:$0xff]  ;;  %v133_v9 = vld [vmem:[%s2754_s1 + $0x8] sm:$0xff]  ;;  %v132_v10 = vld [vmem:[%s2754_s1] sm:$0xff] }
  0x1d   :  { %189 = vmatpush.msra.mxu1 %v166_v5  ;;  %v164_v12 = vld [vmem:[#allocation2] sm:$0xff]  ;;  %v203_v13 = vld [vmem:[#allocation4 + $0x30] sm:$0xff]  ;;  %v204_v18 = vld [vmem:[#allocation4 + $0x38] sm:$0xff] }
  0x1e   :  { %154 = vmatpush.msra.mxu0 %v137_v2  ;;  %v201_v14 = vld [vmem:[#allocation4 + $0x20] sm:$0xff]  ;;  %226 = vmatpush.msra.mxu2 %v203_v13  ;;  %v199_v16 = vld [vmem:[#allocation4 + $0x10] sm:$0xff]  ;;  %v2214_v19 = vld [vmem:[#allocation6 + $0x78] sm:$0xff] }
  0x1f   :  { %190 = vmatpush.msra.mxu1 %v165_v6  ;;  %v131_v11 = vld [vmem:[%s2772_s2] sm:$0xff]  ;;  %246 = vmatpush.msra.mxu3 %v204_v18  ;;  %v202_v20 = vld [vmem:[#allocation4 + $0x28] sm:$0xff]  ;;  %v200_v22 = vld [vmem:[#allocation4 + $0x18] sm:$0xff] }
  0x20   :  { %155 = vmatpush.msra.mxu0 %v136_v3  ;;  %227 = vmatpush.msra.mxu2 %v201_v14  ;;  %v197_v17 = vld [vmem:[#allocation4] sm:$0xff]  ;;  %v2217_v21 = vld [vmem:[#allocation6 + $0x68] sm:$0xff]  ;;  %v2219_v23 = vld [vmem:[#allocation6 + $0x58] sm:$0xff] }
  0x21   :  { %191 = vmatpush.msra.mxu1 %v164_v12  ;;  %v2221_v24 = vld [vmem:[#allocation6 + $0x70] sm:$0xff]  ;;  %247 = vmatpush.msra.mxu3 %v202_v20  ;;  %v198_v25 = vld [vmem:[#allocation4 + $0x8] sm:$0xff]  ;;  %v2232_v27 = vld [vmem:[#allocation6 + $0x60] sm:$0xff] }
  0x22   :  { %156 = vmatpush.msra.mxu0 %v135_v7  ;;  %228 = vmatpush.msra.mxu2 %v199_v16  ;;  %v2226_v26 = vld [vmem:[#allocation6 + $0x48] sm:$0xff]  ;;  %v2234_v28 = vld [vmem:[#allocation6 + $0x38] sm:$0xff]  ;;  %v2236_v29 = vld [vmem:[#allocation6 + $0x50] sm:$0xff] }
  0x23   :  { %305 = vmatpush.msrb.mxu1 %v2221_v24  ;;  %248 = vmatpush.msra.mxu3 %v200_v22  ;;  %v2242_v30 = vld [vmem:[#allocation6 + $0x28] sm:$0xff]  ;;  %v2244_v31 = vld [vmem:[#allocation6 + $0x40] sm:$0xff]  ;;  %v2246_v32 = vld [vmem:[#allocation6 + $0x18] sm:$0xff] }
  0x24   :  { %157 = vmatpush.msra.mxu0 %v134_v8  ;;  %229 = vmatpush.msra.mxu2 %v197_v17  ;;  %v2252_v33 = vld [vmem:[#allocation6 + $0x30] sm:$0xff]  ;;  %v2254_v34 = vld [vmem:[#allocation6 + $0x8] sm:$0xff]  ;;  %v2264_v35 = vld [vmem:[#allocation6 + $0x20] sm:$0xff] }
  0x25   :  { %249 = vmatpush.msra.mxu3 %v198_v25  ;;  %306 = vmatpush.msrb.mxu1 %v2232_v27  ;;  %v2266_v36 = vld [vmem:[#allocation6 + $0x10] sm:$0xff]  ;;  %v2272_v37 = vld [vmem:[#allocation6] sm:$0xff] }
  0x26   :  { %158 = vmatpush.msra.mxu0 %v133_v9  ;;  %325 = vmatpush.msrb.mxu2 %v2214_v19  ;;  %v1829_v39 = vld [vmem:[%s2756_s3] ss:$0 sm:$0xff] }
  0x27   :  { %406 = vmatpush.msrb.mxu3 %v2221_v24  ;;  %307 = vmatpush.msrb.mxu1 %v2236_v29  ;;  %v254_v43 = vld [vmem:[%s2760_s7] sm:$0x3] }
  0x28   :  { %159 = vmatpush.msra.mxu0 %v132_v10  ;;  %326 = vmatpush.msrb.mxu2 %v2217_v21  ;;  %v205_v44 = vld [vmem:[%s2759_s6] sm:$0x3]  ;;  %v262_v45 = vsub.f32 1.0, %v254_v43  ;;  %v256_v51 = vperm.slane %v254_v43, 0  ;;  %v257_v55 = vperm.slane %v254_v43, 1  ;;  %s2082_s6 = smov 64  }
  0x29   :  { %1764 = vmatmul.msk.f32.vlgmr.msra.gmra.mxu0 %vm140_vm0, %v131_v11  ;;  %407 = vmatpush.msrb.mxu3 %v2232_v27  ;;  %v207_v46 = vperm.slane %v205_v44, 0  ;;  %v208_v47 = vperm.slane %v205_v44, 1 }
  0x2a   :  { %426 = vmatpush.msrb.mxu0 %v2214_v19  ;;  %327 = vmatpush.msrb.mxu2 %v2219_v23  ;;  %v264_v48 = vperm.slane %v262_v45, 0  ;;  %v265_v49 = vperm.slane %v262_v45, 1 }
  0x2b   :  { %408 = vmatpush.msrb.mxu3 %v2236_v29  ;;  %308 = vmatpush.msrb.mxu1 %v2244_v31 }
  0x2c   :  { %427 = vmatpush.msrb.mxu0 %v2217_v21  ;;  %328 = vmatpush.msrb.mxu2 %v2226_v26 }
  0x2d   :  { %409 = vmatpush.msrb.mxu3 %v2244_v31  ;;  %309 = vmatpush.msrb.mxu1 %v2252_v33 }
  0x2e   :  { %428 = vmatpush.msrb.mxu0 %v2219_v23  ;;  %329 = vmatpush.msrb.mxu2 %v2234_v28 }
  0x2f   :  { %410 = vmatpush.msrb.mxu3 %v2252_v33  ;;  %310 = vmatpush.msrb.mxu1 %v2264_v35 }
  0x30   :  { %429 = vmatpush.msrb.mxu0 %v2226_v26  ;;  %330 = vmatpush.msrb.mxu2 %v2242_v30 }
  0x31   :  { %411 = vmatpush.msrb.mxu3 %v2264_v35  ;;  %311 = vmatpush.msrb.mxu1 %v2266_v36 }
  0x32   :  { %430 = vmatpush.msrb.mxu0 %v2234_v28  ;;  %331 = vmatpush.msrb.mxu2 %v2246_v32 }
  0x33   :  { %412 = vmatpush.msrb.mxu3 %v2266_v36  ;;  %312 = vmatpush.msrb.mxu1 %v2272_v37 }
  0x34   :  { %431 = vmatpush.msrb.mxu0 %v2242_v30  ;;  %332 = vmatpush.msrb.mxu2 %v2254_v34 }
  0x35   :  { %413 = vmatpush.msrb.mxu3 %v2272_v37 }
  0x36   :  { %432 = vmatpush.msrb.mxu0 %v2246_v32 }
  0x38   :  { %433 = vmatpush.msrb.mxu0 %v2254_v34 }
  0x3a   :  { %648 = vmatpush.msra.mxu0 %v2214_v19 }
  0x3c   :  { %649 = vmatpush.msra.mxu0 %v2217_v21 }
  0x3e   :  { %650 = vmatpush.msra.mxu0 %v2219_v23 }
  0x40   :  { %651 = vmatpush.msra.mxu0 %v2226_v26 }
  0x42   :  { %652 = vmatpush.msra.mxu0 %v2234_v28 }
  0x44   :  { %653 = vmatpush.msra.mxu0 %v2242_v30 }
  0x46   :  { %654 = vmatpush.msra.mxu0 %v2246_v32 }
  0x48   :  { %655 = vmatpush.msra.mxu0 %v2254_v34 }
  0xa6   :  { %v161_v15 = vpop.f32.mrf.mxu0 }
  0xa7   :  { %1765 = vmatmul.msk.f32.vlgmr.msra.gmra.mxu1 %vm172_vm1, %v161_v15 }
  0xa8   :  { %517 = vmatpush.msra.mxu1 %v2221_v24 }
  0xaa   :  { %518 = vmatpush.msra.mxu1 %v2232_v27 }
  0xac   :  { %519 = vmatpush.msra.mxu1 %v2236_v29 }
  0xae   :  { %520 = vmatpush.msra.mxu1 %v2244_v31 }
  0xaf   :  { %313 = vmatmul.f32.vlgmr.msrb.gmra.mxu1 %v2081_v38 }
  0xb0   :  { %521 = vmatpush.msra.mxu1 %v2252_v33 }
  0xb2   :  { %522 = vmatpush.msra.mxu1 %v2264_v35 }
  0xb4   :  { %523 = vmatpush.msra.mxu1 %v2266_v36 }
  0xb6   :  { %524 = vmatpush.msra.mxu1 %v2272_v37 }
  0xb8   :  { %733 = vmatpush.msrb.mxu1 %v2221_v24 }
  0xba   :  { %734 = vmatpush.msrb.mxu1 %v2232_v27 }
  0xbc   :  { %735 = vmatpush.msrb.mxu1 %v2236_v29 }
  0xbe   :  { %736 = vmatpush.msrb.mxu1 %v2244_v31 }
  0xc0   :  { %737 = vmatpush.msrb.mxu1 %v2252_v33 }
  0xc2   :  { %738 = vmatpush.msrb.mxu1 %v2264_v35 }
  0xc4   :  { %739 = vmatpush.msrb.mxu1 %v2266_v36 }
  0xc6   :  { %740 = vmatpush.msrb.mxu1 %v2272_v37 }
 0x124   :  { %v193_v40 = vpop.f32.mrf.mxu1 }
 0x125   :  { %v194_v41 = vadd.f32 %v1829_v39, %v193_v40 }
 0x127   :  { %1832 = vtanh.f32 %v194_v41 }
 0x12c   :  { %v314_v63 = vpop.f32.mrf.mxu1 }
 0x12d   :  { %v2298_v42 = vpop.eup %1832 }
 0x12e   :  { %1766 = vmatmul.msk.f32.vlgmr.msra.gmra.mxu2 %vm172_vm1, %v2298_v42  ;;  %1767 = vmatmul.msk.f32.vlgmr.msra.gmra.mxu3 %vm172_vm1, %v2298_v42 }
 0x12f   :  { %537 = vmatpush.msra.mxu2 %v2214_v19  ;;  %628 = vmatpush.msra.mxu3 %v2221_v24 }
 0x131   :  { %538 = vmatpush.msra.mxu2 %v2217_v21  ;;  %629 = vmatpush.msra.mxu3 %v2232_v27 }
 0x133   :  { %539 = vmatpush.msra.mxu2 %v2219_v23  ;;  %630 = vmatpush.msra.mxu3 %v2236_v29 }
 0x135   :  { %540 = vmatpush.msra.mxu2 %v2226_v26  ;;  %631 = vmatpush.msra.mxu3 %v2244_v31 }
 0x136   :  { %333 = vmatmul.f32.vlgmr.msrb.gmra.mxu2 %v2081_v38 }
 0x137   :  { %541 = vmatpush.msra.mxu2 %v2234_v28  ;;  %632 = vmatpush.msra.mxu3 %v2252_v33 }
 0x139   :  { %542 = vmatpush.msra.mxu2 %v2242_v30  ;;  %633 = vmatpush.msra.mxu3 %v2264_v35 }
 0x13b   :  { %543 = vmatpush.msra.mxu2 %v2246_v32  ;;  %634 = vmatpush.msra.mxu3 %v2266_v36 }
 0x13d   :  { %544 = vmatpush.msra.mxu2 %v2254_v34  ;;  %635 = vmatpush.msra.mxu3 %v2272_v37 }
 0x13f   :  { %753 = vmatpush.msrb.mxu2 %v2214_v19 }
 0x141   :  { %754 = vmatpush.msrb.mxu2 %v2217_v21 }
 0x143   :  { %755 = vmatpush.msrb.mxu2 %v2219_v23 }
 0x145   :  { %756 = vmatpush.msrb.mxu2 %v2226_v26 }
 0x147   :  { %757 = vmatpush.msrb.mxu2 %v2234_v28 }
 0x149   :  { %758 = vmatpush.msrb.mxu2 %v2242_v30 }
 0x14b   :  { %759 = vmatpush.msrb.mxu2 %v2246_v32 }
 0x14d   :  { %760 = vmatpush.msrb.mxu2 %v2254_v34 }
 0x1b1   :  { %v231_v50 = vpop.f32.mrf.mxu2  ;;  %v251_v52 = vpop.f32.mrf.mxu3 }
 0x1b2   :  { %v232_v53 = vadd.f32 %v231_v50, %v207_v46  ;;  %v252_v54 = vadd.f32 %v251_v52, %v208_v47 }
 0x1b4   :  { %v268_v56 = vmul.f32 %v264_v48, %v232_v53  ;;  %v269_v57 = vmul.f32 %v265_v49, %v252_v54  ;;  %v260_v58 = vmul.f32 %v256_v51, %v232_v53  ;;  %v261_v59 = vmul.f32 %v257_v55, %v252_v54 }
 0x1b6   :  { %v288_v60 = vrot.slane %v268_v56, 7  ;;  %v388_v61 = vrot.slane %v269_v57, 5  ;;  %v387_v62 = vrot.slane %v268_v56, 5  ;;  %v497_v0 = vrot.slane %v268_v56, 3 }
 0x1b7   :  { %v498_v1 = vrot.slane %v269_v57, 3  ;;  %v609_v2 = vrot.slane %v269_v57, 1  ;;  %v608_v3 = vrot.slane %v268_v56, 1  ;;  %v289_v15 = vrot.slane %v269_v57, 7 }
 0x1b8   :  { %v2341_v4 = vadd.f32 %v288_v60, %v260_v58  ;;  %v2343_v5 = vadd.f32 %v388_v61, %v261_v59  ;;  %v2345_v6 = vadd.f32 %v387_v62, %v260_v58  ;;  %v2347_v7 = vadd.f32 %v497_v0, %v260_v58 }
 0x1b9   :  { %v2349_v8 = vadd.f32 %v498_v1, %v261_v59  ;;  %v2351_v9 = vadd.f32 %v609_v2, %v261_v59  ;;  %v2353_v10 = vadd.f32 %v608_v3, %v260_v58  ;;  %v2356_v16 = vadd.f32 %v289_v15, %v261_v59  ;;  %v334_v17 = vpop.f32.mrf.mxu2 }
 0x1ba   :  { %v337_v11 = vadd.f32 %v314_v63, %v2341_v4 }
 0x1bb   :  { %v338_v20 = vadd.f32 %v334_v17, %v2356_v16 }
 0x1bc   :  { %v1768_v12 = vmul.f32 -1.442695, %v337_v11 }
 0x1bd   :  { %v1769_v48 = vmul.f32 -1.442695, %v338_v20 }
 0x1be   :  { %1834 = vpow2.f32 %v1768_v12 }
 0x1c4   :  { %v1835_v13 = vpop.eup %1834 }
 0x1c5   :  { %v342_v14 = vadd.f32 1.0, %v1835_v13 }
 0x1c7   :  { %1836 = vrcp.f32 %v342_v14  ;;  %v354_v38 = vand.u32 2147483648, %v342_v14  ;;  %v352_v40 = vand.u32 2147483647, %v342_v14  ;;  %vm348_vm3 = vweird.f32 %v342_v14 }
 0x1c8   :  { %1838 = vtanh.f32 %v338_v20 }
 0x1c9   :  { %v355_v43 = vor.u32 1.1754944e-38, %v354_v38  ;;  %vm353_vm5 = vcmp.eq.f32.partialorder %v352_v40, 8.507059e+37  ;;  %1840 = vpow2.f32 %v1769_v48 }
 0x1cd   :  { %v1837_v18 = vpop.eup %1836 }
 0x1ce   :  { %v344_v22 = vmul.f32 %v1837_v18, %v342_v14  ;;  %vm349_vm2 = vweird.f32 %v1837_v18  ;;  %v1839_v45 = vpop.eup %1838 }
 0x1cf   :  { %vm350_vm4 = vmor %vm348_vm3, %vm349_vm2  ;;  %v1841_v49 = vpop.eup %1840 }
 0x1d0   :  { %v345_v25 = vsub.f32 1.0, %v344_v22  ;;  %v362_v50 = vadd.f32 1.0, %v1841_v49 }
 0x1d2   :  { %v346_v39 = vmul.f32 %v1837_v18, %v345_v25  ;;  %1842 = vrcp.f32 %v362_v50  ;;  %v374_v59 = vand.u32 2147483648, %v362_v50  ;;  %vm368_vm7 = vweird.f32 %v362_v50 }
 0x1d3   :  { %v372_v60 = vand.u32 2147483647, %v362_v50 }
 0x1d4   :  { %v347_v41 = vadd.f32 %v1837_v18, %v346_v39  ;;  %v375_v62 = vor.u32 1.1754944e-38, %v374_v59 }
 0x1d5   :  { %vm373_vm9 = vcmp.eq.f32.partialorder %v372_v60, 8.507059e+37 }
 0x1d6   :  { %v351_v44 = vsel %vm350_vm4, %v1837_v18, %v347_v41 }
 0x1d7   :  { %v356_v46 = vsel %vm353_vm5, %v355_v43, %v351_v44 }
 0x1d8   :  { %v379_v47 = vmul.f32 %v1839_v45, %v356_v46  ;;  %v1843_v51 = vpop.eup %1842  ;;  %v378_v55 = vmul.f32 0.0, %v356_v46 }
 0x1d9   :  { %v364_v52 = vmul.f32 %v1843_v51, %v362_v50  ;;  %vm369_vm6 = vweird.f32 %v1843_v51 }
 0x1da   :  { %381 = vrot.lane.b32.xlu0 %v379_v47, %s2082_s6  ;;  %vm370_vm8 = vmor %vm368_vm7, %vm369_vm6 }
 0x1db   :  { %v365_v53 = vsub.f32 1.0, %v364_v52 }
 0x1dd   :  { %v366_v54 = vmul.f32 %v1843_v51, %v365_v53 }
 0x1df   :  { %v367_v58 = vadd.f32 %v1843_v51, %v366_v54 }
 0x1e1   :  { %v371_v61 = vsel %vm370_vm8, %v1843_v51, %v367_v58 }
 0x1e2   :  { %v376_v0 = vsel %vm373_vm9, %v375_v62, %v371_v61 }
 0x24c   :  { %v382_v56 = vpop.permute.xlu0 %381 }
 0x24d   :  { %v2360_v57 = vadd.f32 %v382_v56, %v378_v55 }
 0x24f   :  { %1844 = vtanh.f32 %v2360_v57  ;;  %v486_v45 = vrot.slane %v2360_v57, 7 }
 0x255   :  { %v1845_v63 = vpop.eup %1844 }
 0x256   :  { %v2363_v1 = vmul.f32 %v1845_v63, %v376_v0 }
 0x258   :  { %394 = vrot.lane.b32.xlu0 %v2363_v1, %s2082_s6 }
 0x2ca   :  { %v395_v2 = vpop.permute.xlu0 %394 }
 0x2cb   :  { %1770 = vmatmul.msk.f32.vlgmr.msrb.gmra.mxu3 %vm140_vm0, %v395_v2  ;;  %1771 = vmatmul.msk.f32.vlgmr.msrb.gmra.mxu0 %vm140_vm0, %v395_v2 }
 0x2cc   :  { %838 = vmatpush.msrb.mxu3 %v2221_v24  ;;  %858 = vmatpush.msrb.mxu0 %v2214_v19 }
 0x2ce   :  { %839 = vmatpush.msrb.mxu3 %v2232_v27  ;;  %859 = vmatpush.msrb.mxu0 %v2217_v21 }
 0x2d0   :  { %840 = vmatpush.msrb.mxu3 %v2236_v29  ;;  %860 = vmatpush.msrb.mxu0 %v2219_v23 }
 0x2d2   :  { %841 = vmatpush.msrb.mxu3 %v2244_v31  ;;  %861 = vmatpush.msrb.mxu0 %v2226_v26 }
 0x2d4   :  { %842 = vmatpush.msrb.mxu3 %v2252_v33  ;;  %862 = vmatpush.msrb.mxu0 %v2234_v28 }
 0x2d6   :  { %843 = vmatpush.msrb.mxu3 %v2264_v35  ;;  %863 = vmatpush.msrb.mxu0 %v2242_v30 }
 0x2d8   :  { %844 = vmatpush.msrb.mxu3 %v2266_v36  ;;  %864 = vmatpush.msrb.mxu0 %v2246_v32 }
 0x2da   :  { %845 = vmatpush.msrb.mxu3 %v2272_v37  ;;  %865 = vmatpush.msrb.mxu0 %v2254_v34 }
 0x348   :  { %v435_v17 = vpop.f32.mrf.mxu0 }
 0x349   :  { %v441_v18 = vrot.slane %v435_v17, 7 }
 0x34b   :  { %v445_v22 = vadd.f32 %v441_v18, %v2343_v5 }
 0x34d   :  { %v1773_v51 = vmul.f32 -1.442695, %v445_v22 }
 0x34e   :  { %v415_v3 = vpop.f32.mrf.mxu3 }
 0x34f   :  { %v440_v11 = vrot.slane %v415_v3, 7 }
 0x351   :  { %v444_v12 = vadd.f32 %v440_v11, %v2345_v6 }
 0x353   :  { %v1772_v13 = vmul.f32 -1.442695, %v444_v12 }
 0x355   :  { %1846 = vpow2.f32 %v1772_v13 }
 0x35b   :  { %v1847_v14 = vpop.eup %1846 }
 0x35c   :  { %v449_v15 = vadd.f32 1.0, %v1847_v14 }
 0x35e   :  { %1848 = vrcp.f32 %v449_v15  ;;  %v461_v39 = vand.u32 2147483648, %v449_v15  ;;  %v459_v41 = vand.u32 2147483647, %v449_v15  ;;  %vm455_vm11 = vweird.f32 %v449_v15 }
 0x35f   :  { %1850 = vtanh.f32 %v445_v22 }
 0x360   :  { %v462_v44 = vor.u32 1.1754944e-38, %v461_v39  ;;  %vm460_vm13 = vcmp.eq.f32.partialorder %v459_v41, 8.507059e+37  ;;  %1852 = vpow2.f32 %v1773_v51 }
 0x364   :  { %v1849_v20 = vpop.eup %1848 }
 0x365   :  { %v451_v25 = vmul.f32 %v1849_v20, %v449_v15  ;;  %vm456_vm10 = vweird.f32 %v1849_v20  ;;  %v1851_v47 = vpop.eup %1850 }
 0x366   :  { %vm457_vm12 = vmor %vm455_vm11, %vm456_vm10  ;;  %v1853_v52 = vpop.eup %1852  ;;  %vm1139_vm11 = vcmask 1040384  }
 0x367   :  { %v452_v38 = vsub.f32 1.0, %v451_v25  ;;  %v469_v53 = vadd.f32 1.0, %v1853_v52 }
 0x369   :  { %v453_v40 = vmul.f32 %v1849_v20, %v452_v38  ;;  %1854 = vrcp.f32 %v469_v53  ;;  %v481_v61 = vand.u32 2147483648, %v469_v53  ;;  %vm475_vm15 = vweird.f32 %v469_v53 }
 0x36a   :  { %v479_v62 = vand.u32 2147483647, %v469_v53 }
 0x36b   :  { %v454_v43 = vadd.f32 %v1849_v20, %v453_v40  ;;  %v482_v0 = vor.u32 1.1754944e-38, %v481_v61 }
 0x36c   :  { %vm480_vm3 = vcmp.eq.f32.partialorder %v479_v62, 8.507059e+37 }
 0x36d   :  { %v458_v46 = vsel %vm457_vm12, %v1849_v20, %v454_v43 }
 0x36e   :  { %v463_v48 = vsel %vm460_vm13, %v462_v44, %v458_v46  ;;  %vm1141_vm13 = vcmask 1041408  }
 0x36f   :  { %v489_v49 = vmul.f32 %v1851_v47, %v463_v48  ;;  %v488_v50 = vmul.f32 %v486_v45, %v463_v48  ;;  %v1855_v54 = vpop.eup %1854 }
 0x370   :  { %v471_v55 = vmul.f32 %v1855_v54, %v469_v53  ;;  %vm476_vm14 = vweird.f32 %v1855_v54 }
 0x371   :  { %491 = vrot.lane.b32.xlu1 %v489_v49, %s2082_s6  ;;  %vm477_vm2 = vmor %vm475_vm15, %vm476_vm14 }
 0x372   :  { %v472_v56 = vsub.f32 1.0, %v471_v55 }
 0x374   :  { %v473_v58 = vmul.f32 %v1855_v54, %v472_v56 }
 0x376   :  { %v474_v57 = vadd.f32 %v1855_v54, %v473_v58 }
 0x378   :  { %v478_v63 = vsel %vm477_vm2, %v1855_v54, %v474_v57 }
 0x379   :  { %v483_v3 = vsel %vm480_vm3, %v482_v0, %v478_v63 }
 0x3e3   :  { %v492_v59 = vpop.permute.xlu1 %491 }
 0x3e4   :  { %v2389_v60 = vadd.f32 %v492_v59, %v488_v50 }
 0x3e6   :  { %1856 = vtanh.f32 %v2389_v60  ;;  %v597_v49 = vrot.slane %v2389_v60, 7 }
 0x3ec   :  { %v1857_v2 = vpop.eup %1856 }
 0x3ed   :  { %v2392_v11 = vmul.f32 %v1857_v2, %v483_v3 }
 0x3ef   :  { %v504_v12 = vrot.slane %v2392_v11, 1 }
 0x3f1   :  { %505 = vrot.lane.b32.xlu1 %v504_v12, %s2082_s6 }
 0x463   :  { %v506_v13 = vpop.permute.xlu1 %505 }
 0x464   :  { %1774 = vmatmul.msk.f32.vlgmr.msra.gmra.mxu1 %vm140_vm0, %v506_v13  ;;  %1775 = vmatmul.msk.f32.vlgmr.msra.gmra.mxu2 %vm140_vm0, %v506_v13 }
 0x465   :  { %943 = vmatpush.msra.mxu1 %v2221_v24  ;;  %963 = vmatpush.msra.mxu2 %v2214_v19 }
 0x467   :  { %944 = vmatpush.msra.mxu1 %v2232_v27  ;;  %964 = vmatpush.msra.mxu2 %v2217_v21 }
 0x469   :  { %945 = vmatpush.msra.mxu1 %v2236_v29  ;;  %965 = vmatpush.msra.mxu2 %v2219_v23 }
 0x46b   :  { %946 = vmatpush.msra.mxu1 %v2244_v31  ;;  %966 = vmatpush.msra.mxu2 %v2226_v26 }
 0x46d   :  { %947 = vmatpush.msra.mxu1 %v2252_v33  ;;  %967 = vmatpush.msra.mxu2 %v2234_v28 }
 0x46f   :  { %948 = vmatpush.msra.mxu1 %v2264_v35  ;;  %968 = vmatpush.msra.mxu2 %v2242_v30 }
 0x471   :  { %949 = vmatpush.msra.mxu1 %v2266_v36  ;;  %969 = vmatpush.msra.mxu2 %v2246_v32 }
 0x473   :  { %950 = vmatpush.msra.mxu1 %v2272_v37  ;;  %970 = vmatpush.msra.mxu2 %v2254_v34 }
 0x4e1   :  { %v526_v14 = vpop.f32.mrf.mxu1 }
 0x4e2   :  { %v551_v15 = vrot.slane %v526_v14, 6 }
 0x4e4   :  { %v555_v17 = vadd.f32 %v551_v15, %v2347_v7 }
 0x4e6   :  { %v1776_v18 = vmul.f32 -1.442695, %v555_v17 }
 0x4e7   :  { %v546_v25 = vpop.f32.mrf.mxu2 }
 0x4e8   :  { %1858 = vpow2.f32 %v1776_v18  ;;  %v552_v38 = vrot.slane %v546_v25, 6  ;;  %v1140_v18 = vsel %vm1139_vm11, %v2363_v1, %v2392_v11 }
 0x4ea   :  { %v556_v40 = vadd.f32 %v552_v38, %v2349_v8 }
 0x4ec   :  { %v1777_v55 = vmul.f32 -1.442695, %v556_v40 }
 0x4ee   :  { %v1859_v20 = vpop.eup %1858 }
 0x4ef   :  { %v560_v22 = vadd.f32 1.0, %v1859_v20 }
 0x4f1   :  { %1860 = vrcp.f32 %v560_v22  ;;  %v572_v44 = vand.u32 2147483648, %v560_v22  ;;  %v570_v46 = vand.u32 2147483647, %v560_v22  ;;  %vm566_vm5 = vweird.f32 %v560_v22 }
 0x4f2   :  { %1862 = vtanh.f32 %v556_v40 }
 0x4f3   :  { %v573_v48 = vor.u32 1.1754944e-38, %v572_v44  ;;  %vm571_vm7 = vcmp.eq.f32.partialorder %v570_v46, 8.507059e+37  ;;  %1864 = vpow2.f32 %v1777_v55 }
 0x4f7   :  { %v1861_v39 = vpop.eup %1860 }
 0x4f8   :  { %v562_v41 = vmul.f32 %v1861_v39, %v560_v22  ;;  %vm567_vm4 = vweird.f32 %v1861_v39  ;;  %v1863_v51 = vpop.eup %1862 }
 0x4f9   :  { %vm568_vm6 = vmor %vm566_vm5, %vm567_vm4  ;;  %v1865_v56 = vpop.eup %1864 }
 0x4fa   :  { %v563_v43 = vsub.f32 1.0, %v562_v41  ;;  %v580_v58 = vadd.f32 1.0, %v1865_v56 }
 0x4fc   :  { %v564_v45 = vmul.f32 %v1861_v39, %v563_v43  ;;  %1866 = vrcp.f32 %v580_v58  ;;  %v592_v2 = vand.u32 2147483648, %v580_v58  ;;  %vm586_vm9 = vweird.f32 %v580_v58 }
 0x4fd   :  { %v590_v3 = vand.u32 2147483647, %v580_v58 }
 0x4fe   :  { %v565_v47 = vadd.f32 %v1861_v39, %v564_v45  ;;  %v593_v13 = vor.u32 1.1754944e-38, %v592_v2 }
 0x4ff   :  { %vm591_vm12 = vcmp.eq.f32.partialorder %v590_v3, 8.507059e+37 }
 0x500   :  { %v569_v50 = vsel %vm568_vm6, %v1861_v39, %v565_v47 }
 0x501   :  { %v574_v52 = vsel %vm571_vm7, %v573_v48, %v569_v50 }
 0x502   :  { %v600_v53 = vmul.f32 %v1863_v51, %v574_v52  ;;  %v599_v54 = vmul.f32 %v597_v49, %v574_v52  ;;  %v1867_v59 = vpop.eup %1866 }
 0x503   :  { %v582_v57 = vmul.f32 %v1867_v59, %v580_v58  ;;  %vm587_vm8 = vweird.f32 %v1867_v59 }
 0x504   :  { %602 = vrot.lane.b32.xlu2 %v600_v53, %s2082_s6  ;;  %vm588_vm10 = vmor %vm586_vm9, %vm587_vm8  ;;  %vm1143_vm8 = vcmask 1042432  }
 0x505   :  { %v583_v61 = vsub.f32 1.0, %v582_v57 }
 0x507   :  { %v584_v62 = vmul.f32 %v1867_v59, %v583_v61 }
 0x509   :  { %v585_v60 = vadd.f32 %v1867_v59, %v584_v62 }
 0x50b   :  { %v589_v12 = vsel %vm588_vm10, %v1867_v59, %v585_v60 }
 0x50c   :  { %v594_v15 = vsel %vm591_vm12, %v593_v13, %v589_v12 }
 0x55e   :  { %v603_v63 = vpop.permute.xlu2 %602 }
 0x55f   :  { %v2418_v0 = vadd.f32 %v603_v63, %v599_v54 }
 0x561   :  { %1868 = vtanh.f32 %v2418_v0  ;;  %v708_v39 = vrot.slane %v2418_v0, 7 }
 0x567   :  { %v1869_v14 = vpop.eup %1868 }
 0x568   :  { %v2421_v17 = vmul.f32 %v1869_v14, %v594_v15 }
 0x56a   :  { %v615_v20 = vrot.slane %v2421_v17, 2  ;;  %v2429_v22 = vsel %vm1141_vm13, %v1140_v18, %v2421_v17 }
 0x56c   :  { %616 = vrot.lane.b32.xlu2 %v615_v20, %s2082_s6 }
 0x5c6   :  { %v617_v25 = vpop.permute.xlu2 %616 }
 0x5c7   :  { %1778 = vmatmul.msk.f32.vlgmr.msra.gmra.mxu3 %vm140_vm0, %v617_v25  ;;  %1779 = vmatmul.msk.f32.vlgmr.msra.gmra.mxu0 %vm140_vm0, %v617_v25 }
 0x5c8   :  { %1048 = vmatpush.msra.mxu3 %v2221_v24  ;;  %1068 = vmatpush.msra.mxu0 %v2214_v19 }
 0x5ca   :  { %1049 = vmatpush.msra.mxu3 %v2232_v27  ;;  %1069 = vmatpush.msra.mxu0 %v2217_v21 }
 0x5cc   :  { %1050 = vmatpush.msra.mxu3 %v2236_v29  ;;  %1070 = vmatpush.msra.mxu0 %v2219_v23 }
 0x5ce   :  { %1051 = vmatpush.msra.mxu3 %v2244_v31  ;;  %1071 = vmatpush.msra.mxu0 %v2226_v26 }
 0x5d0   :  { %1052 = vmatpush.msra.mxu3 %v2252_v33  ;;  %1072 = vmatpush.msra.mxu0 %v2234_v28 }
 0x5d2   :  { %1053 = vmatpush.msra.mxu3 %v2264_v35  ;;  %1073 = vmatpush.msra.mxu0 %v2242_v30 }
 0x5d4   :  { %1054 = vmatpush.msra.mxu3 %v2266_v36  ;;  %1074 = vmatpush.msra.mxu0 %v2246_v32 }
 0x5d6   :  { %1055 = vmatpush.msra.mxu3 %v2272_v37  ;;  %1075 = vmatpush.msra.mxu0 %v2254_v34 }
 0x644   :  { %v657_v28 = vpop.f32.mrf.mxu0 }
 0x645   :  { %v663_v29 = vrot.slane %v657_v28, 5 }
 0x647   :  { %v667_v31 = vadd.f32 %v663_v29, %v2351_v9 }
 0x649   :  { %v1781_v46 = vmul.f32 -1.442695, %v667_v31 }
 0x64a   :  { %v637_v19 = vpop.f32.mrf.mxu3 }
 0x64b   :  { %v662_v21 = vrot.slane %v637_v19, 5 }
 0x64d   :  { %v666_v23 = vadd.f32 %v662_v21, %v2353_v10 }
 0x64f   :  { %v1780_v24 = vmul.f32 -1.442695, %v666_v23 }
 0x651   :  { %1870 = vpow2.f32 %v1780_v24 }
 0x657   :  { %v1871_v26 = vpop.eup %1870 }
 0x658   :  { %v671_v27 = vadd.f32 1.0, %v1871_v26 }
 0x65a   :  { %1872 = vrcp.f32 %v671_v27  ;;  %v683_v35 = vand.u32 2147483648, %v671_v27  ;;  %v681_v34 = vand.u32 2147483647, %v671_v27  ;;  %vm677_vm15 = vweird.f32 %v671_v27 }
 0x65b   :  { %1874 = vtanh.f32 %v667_v31 }
 0x65c   :  { %v684_v38 = vor.u32 1.1754944e-38, %v683_v35  ;;  %vm682_vm3 = vcmp.eq.f32.partialorder %v681_v34, 8.507059e+37  ;;  %1876 = vpow2.f32 %v1781_v46 }
 0x660   :  { %v1873_v30 = vpop.eup %1872 }
 0x661   :  { %v673_v33 = vmul.f32 %v1873_v30, %v671_v27  ;;  %vm678_vm14 = vweird.f32 %v1873_v30  ;;  %v1875_v41 = vpop.eup %1874 }
 0x662   :  { %vm679_vm2 = vmor %vm677_vm15, %vm678_vm14  ;;  %v1877_v47 = vpop.eup %1876 }
 0x663   :  { %v674_v32 = vsub.f32 1.0, %v673_v33  ;;  %v691_v48 = vadd.f32 1.0, %v1877_v47 }
 0x665   :  { %v675_v36 = vmul.f32 %v1873_v30, %v674_v32  ;;  %1878 = vrcp.f32 %v691_v48  ;;  %v703_v56 = vand.u32 2147483648, %v691_v48  ;;  %vm697_vm5 = vweird.f32 %v691_v48 }
 0x666   :  { %v701_v58 = vand.u32 2147483647, %v691_v48 }
 0x667   :  { %v676_v37 = vadd.f32 %v1873_v30, %v675_v36  ;;  %v704_v57 = vor.u32 1.1754944e-38, %v703_v56 }
 0x668   :  { %vm702_vm7 = vcmp.eq.f32.partialorder %v701_v58, 8.507059e+37 }
 0x669   :  { %v680_v40 = vsel %vm679_vm2, %v1873_v30, %v676_v37 }
 0x66a   :  { %v685_v43 = vsel %vm682_vm3, %v684_v38, %v680_v40 }
 0x66b   :  { %v711_v44 = vmul.f32 %v1875_v41, %v685_v43  ;;  %v710_v45 = vmul.f32 %v708_v39, %v685_v43  ;;  %v1879_v49 = vpop.eup %1878 }
 0x66c   :  { %v693_v50 = vmul.f32 %v1879_v49, %v691_v48  ;;  %vm698_vm4 = vweird.f32 %v1879_v49 }
 0x66d   :  { %713 = vrot.lane.b32.xlu0 %v711_v44, %s2082_s6  ;;  %vm699_vm6 = vmor %vm697_vm5, %vm698_vm4  ;;  %vm1145_vm5 = vcmask 1043456  }
 0x66e   :  { %v694_v51 = vsub.f32 1.0, %v693_v50 }
 0x670   :  { %v695_v52 = vmul.f32 %v1879_v49, %v694_v51 }
 0x672   :  { %v696_v55 = vadd.f32 %v1879_v49, %v695_v52 }
 0x674   :  { %v700_v59 = vsel %vm699_vm6, %v1879_v49, %v696_v55 }
 0x675   :  { %v705_v62 = vsel %vm702_vm7, %v704_v57, %v700_v59 }
 0x6df   :  { %v714_v53 = vpop.permute.xlu0 %713 }
 0x6e0   :  { %v716_v54 = vadd.f32 %v714_v53, %v710_v45 }
 0x6e2   :  { %1880 = vtanh.f32 %v716_v54  ;;  %v813_v29 = vrot.slane %v716_v54, 7 }
 0x6e8   :  { %v1881_v61 = vpop.eup %1880 }
 0x6e9   :  { %v2454_v63 = vmul.f32 %v1881_v61, %v705_v62 }
 0x6eb   :  { %v720_v0 = vrot.slane %v2454_v63, 3  ;;  %v2460_v60 = vsel %vm1143_vm8, %v2429_v22, %v2454_v63 }
 0x6ed   :  { %721 = vrot.lane.b32.xlu1 %v720_v0, %s2082_s6 }
 0x75f   :  { %v722_v2 = vpop.permute.xlu1 %721 }
 0x760   :  { %1782 = vmatmul.msk.f32.vlgmr.msrb.gmra.mxu1 %vm140_vm0, %v722_v2  ;;  %1783 = vmatmul.msk.f32.vlgmr.msrb.gmra.mxu2 %vm140_vm0, %v722_v2 }
 0x7dd   :  { %v742_v3 = vpop.f32.mrf.mxu1 }
 0x7de   :  { %v767_v12 = vrot.slane %v742_v3, 4 }
 0x7e0   :  { %v771_v13 = vadd.f32 %v767_v12, %v2341_v4 }
 0x7e2   :  { %v1784_v14 = vmul.f32 -1.442695, %v771_v13 }
 0x7e3   :  { %v762_v20 = vpop.f32.mrf.mxu2 }
 0x7e4   :  { %1882 = vpow2.f32 %v1784_v14  ;;  %v768_v25 = vrot.slane %v762_v20, 4 }
 0x7e6   :  { %v772_v19 = vadd.f32 %v768_v25, %v2356_v16 }
 0x7e8   :  { %v1785_v16 = vmul.f32 -1.442695, %v772_v19 }
 0x7ea   :  { %v1883_v15 = vpop.eup %1882 }
 0x7eb   :  { %v776_v18 = vadd.f32 1.0, %v1883_v15 }
 0x7ed   :  { %1884 = vrcp.f32 %v776_v18  ;;  %v788_v24 = vand.u32 2147483648, %v776_v18  ;;  %v786_v27 = vand.u32 2147483647, %v776_v18  ;;  %vm782_vm10 = vweird.f32 %v776_v18 }
 0x7ee   :  { %1886 = vtanh.f32 %v772_v19 }
 0x7ef   :  { %v789_v4 = vor.u32 1.1754944e-38, %v788_v24  ;;  %vm787_vm14 = vcmp.eq.f32.partialorder %v786_v27, 8.507059e+37  ;;  %1888 = vpow2.f32 %v1785_v16 }
 0x7f3   :  { %v1885_v22 = vpop.eup %1884 }
 0x7f4   :  { %v778_v21 = vmul.f32 %v1885_v22, %v776_v18  ;;  %vm783_vm9 = vweird.f32 %v1885_v22  ;;  %v1887_v31 = vpop.eup %1886 }
 0x7f5   :  { %vm784_vm12 = vmor %vm782_vm10, %vm783_vm9  ;;  %v1889_v36 = vpop.eup %1888 }
 0x7f6   :  { %v779_v23 = vsub.f32 1.0, %v778_v21  ;;  %v796_v34 = vadd.f32 1.0, %v1889_v36 }
 0x7f8   :  { %v780_v26 = vmul.f32 %v1885_v22, %v779_v23  ;;  %1890 = vrcp.f32 %v796_v34  ;;  %v808_v45 = vand.u32 2147483648, %v796_v34  ;;  %vm802_vm2 = vweird.f32 %v796_v34 }
 0x7f9   :  { %v806_v46 = vand.u32 2147483647, %v796_v34 }
 0x7fa   :  { %v781_v28 = vadd.f32 %v1885_v22, %v780_v26  ;;  %v809_v48 = vor.u32 1.1754944e-38, %v808_v45 }
 0x7fb   :  { %vm807_vm4 = vcmp.eq.f32.partialorder %v806_v46, 8.507059e+37 }
 0x7fc   :  { %v785_v30 = vsel %vm784_vm12, %v1885_v22, %v781_v28 }
 0x7fd   :  { %v790_v33 = vsel %vm787_vm14, %v789_v4, %v785_v30 }
 0x7fe   :  { %v816_v32 = vmul.f32 %v1887_v31, %v790_v33  ;;  %v815_v35 = vmul.f32 %v813_v29, %v790_v33  ;;  %v1891_v37 = vpop.eup %1890 }
 0x7ff   :  { %v798_v38 = vmul.f32 %v1891_v37, %v796_v34  ;;  %vm803_vm15 = vweird.f32 %v1891_v37 }
 0x800   :  { %818 = vrot.lane.b32.xlu2 %v816_v32, %s2082_s6  ;;  %vm804_vm3 = vmor %vm802_vm2, %vm803_vm15 }
 0x801   :  { %v799_v39 = vsub.f32 1.0, %v798_v38 }
 0x803   :  { %v800_v40 = vmul.f32 %v1891_v37, %v799_v39 }
 0x805   :  { %v801_v44 = vadd.f32 %v1891_v37, %v800_v40 }
 0x807   :  { %v805_v47 = vsel %vm804_vm3, %v1891_v37, %v801_v44  ;;  %vm1147_vm3 = vcmask 1044480  }
 0x808   :  { %v810_v50 = vsel %vm807_vm4, %v809_v48, %v805_v47 }
 0x85a   :  { %v819_v41 = vpop.permute.xlu2 %818 }
 0x85b   :  { %v821_v43 = vadd.f32 %v819_v41, %v815_v35 }
 0x85d   :  { %1892 = vtanh.f32 %v821_v43  ;;  %v918_v20 = vrot.slane %v821_v43, 7 }
 0x863   :  { %v1893_v49 = vpop.eup %1892 }
 0x864   :  { %v2468_v51 = vmul.f32 %v1893_v49, %v810_v50 }
 0x866   :  { %v825_v52 = vrot.slane %v2468_v51, 4  ;;  %v2474_v53 = vsel %vm1145_vm5, %v2460_v60, %v2468_v51 }
 0x868   :  { %826 = vrot.lane.b32.xlu0 %v825_v52, %s2082_s6 }
 0x8da   :  { %v827_v54 = vpop.permute.xlu0 %826 }
 0x8db   :  { %1786 = vmatmul.msk.f32.vlgmr.msrb.gmra.mxu3 %vm140_vm0, %v827_v54  ;;  %1787 = vmatmul.msk.f32.vlgmr.msrb.gmra.mxu0 %vm140_vm0, %v827_v54 }
 0x958   :  { %v867_v62 = vpop.f32.mrf.mxu0 }
 0x959   :  { %v873_v0 = vrot.slane %v867_v62, 3 }
 0x95b   :  { %v877_v2 = vadd.f32 %v873_v0, %v2343_v5 }
 0x95d   :  { %v1789_v5 = vmul.f32 -1.442695, %v877_v2 }
 0x95e   :  { %v847_v55 = vpop.f32.mrf.mxu3 }
 0x95f   :  { %v872_v56 = vrot.slane %v847_v55, 3 }
 0x961   :  { %v876_v58 = vadd.f32 %v872_v56, %v2345_v6 }
 0x963   :  { %v1788_v59 = vmul.f32 -1.442695, %v876_v58 }
 0x965   :  { %1894 = vpow2.f32 %v1788_v59 }
 0x96b   :  { %v1895_v57 = vpop.eup %1894 }
 0x96c   :  { %v881_v61 = vadd.f32 1.0, %v1895_v57 }
 0x96e   :  { %1896 = vrcp.f32 %v881_v61  ;;  %v893_v13 = vand.u32 2147483648, %v881_v61  ;;  %v891_v15 = vand.u32 2147483647, %v881_v61  ;;  %vm887_vm7 = vweird.f32 %v881_v61 }
 0x96f   :  { %1898 = vtanh.f32 %v877_v2 }
 0x970   :  { %v894_v6 = vor.u32 1.1754944e-38, %v893_v13  ;;  %vm892_vm10 = vcmp.eq.f32.partialorder %v891_v15, 8.507059e+37  ;;  %1900 = vpow2.f32 %v1789_v5 }
 0x974   :  { %v1897_v60 = vpop.eup %1896 }
 0x975   :  { %v883_v3 = vmul.f32 %v1897_v60, %v881_v61  ;;  %vm888_vm6 = vweird.f32 %v1897_v60  ;;  %v1899_v22 = vpop.eup %1898 }
 0x976   :  { %vm889_vm9 = vmor %vm887_vm7, %vm888_vm6  ;;  %v1901_v24 = vpop.eup %1900 }
 0x977   :  { %v884_v12 = vsub.f32 1.0, %v883_v3  ;;  %v901_v26 = vadd.f32 1.0, %v1901_v24 }
 0x979   :  { %v885_v14 = vmul.f32 %v1897_v60, %v884_v12  ;;  %1902 = vrcp.f32 %v901_v26  ;;  %v913_v32 = vand.u32 2147483648, %v901_v26  ;;  %vm907_vm14 = vweird.f32 %v901_v26 }
 0x97a   :  { %v911_v35 = vand.u32 2147483647, %v901_v26 }
 0x97b   :  { %v886_v18 = vadd.f32 %v1897_v60, %v885_v14  ;;  %v914_v36 = vor.u32 1.1754944e-38, %v913_v32 }
 0x97c   :  { %vm912_vm2 = vcmp.eq.f32.partialorder %v911_v35, 8.507059e+37 }
 0x97d   :  { %v890_v25 = vsel %vm889_vm9, %v1897_v60, %v886_v18 }
 0x97e   :  { %v895_v19 = vsel %vm892_vm10, %v894_v6, %v890_v25 }
 0x97f   :  { %v921_v21 = vmul.f32 %v1899_v22, %v895_v19  ;;  %v920_v23 = vmul.f32 %v918_v20, %v895_v19  ;;  %v1903_v27 = vpop.eup %1902 }
 0x980   :  { %v903_v28 = vmul.f32 %v1903_v27, %v901_v26  ;;  %vm908_vm12 = vweird.f32 %v1903_v27 }
 0x981   :  { %923 = vrot.lane.b32.xlu1 %v921_v21, %s2082_s6  ;;  %vm909_vm15 = vmor %vm907_vm14, %vm908_vm12 }
 0x982   :  { %v904_v4 = vsub.f32 1.0, %v903_v28 }
 0x984   :  { %v905_v29 = vmul.f32 %v1903_v27, %v904_v4 }
 0x986   :  { %v906_v33 = vadd.f32 %v1903_v27, %v905_v29 }
 0x988   :  { %v910_v16 = vsel %vm909_vm15, %v1903_v27, %v906_v33 }
 0x989   :  { %v915_v37 = vsel %vm912_vm2, %v914_v36, %v910_v16  ;;  %vm1149_vm2 = vcmask 1045504  }
 0x9f3   :  { %v924_v30 = vpop.permute.xlu1 %923 }
 0x9f4   :  { %v926_v31 = vadd.f32 %v924_v30, %v920_v23 }
 0x9f6   :  { %1904 = vtanh.f32 %v926_v31  ;;  %v1023_v61 = vrot.slane %v926_v31, 7 }
 0x9fc   :  { %v1905_v34 = vpop.eup %1904 }
 0x9fd   :  { %v2482_v38 = vmul.f32 %v1905_v34, %v915_v37 }
 0x9ff   :  { %v930_v39 = vrot.slane %v2482_v38, 5  ;;  %v2488_v40 = vsel %vm1147_vm3, %v2474_v53, %v2482_v38 }
 0xa01   :  { %931 = vrot.lane.b32.xlu2 %v930_v39, %s2082_s6 }
 0xa5b   :  { %v932_v41 = vpop.permute.xlu2 %931 }
 0xa5c   :  { %1790 = vmatmul.msk.f32.vlgmr.msra.gmra.mxu1 %vm140_vm0, %v932_v41  ;;  %1791 = vmatmul.msk.f32.vlgmr.msra.gmra.mxu2 %vm140_vm0, %v932_v41 }
 0xad9   :  { %v952_v43 = vpop.f32.mrf.mxu1 }
 0xada   :  { %v977_v44 = vrot.slane %v952_v43, 2 }
 0xadc   :  { %v981_v45 = vadd.f32 %v977_v44, %v2347_v7 }
 0xade   :  { %v1792_v46 = vmul.f32 -1.442695, %v981_v45 }
 0xadf   :  { %v972_v49 = vpop.f32.mrf.mxu2 }
 0xae0   :  { %1906 = vpow2.f32 %v1792_v46  ;;  %v978_v50 = vrot.slane %v972_v49, 2 }
 0xae2   :  { %v982_v53 = vadd.f32 %v978_v50, %v2349_v8 }
 0xae4   :  { %v1793_v8 = vmul.f32 -1.442695, %v982_v53 }
 0xae6   :  { %v1907_v47 = vpop.eup %1906 }
 0xae7   :  { %v986_v48 = vadd.f32 1.0, %v1907_v47 }
 0xae9   :  { %1908 = vrcp.f32 %v986_v48  ;;  %v998_v56 = vand.u32 2147483648, %v986_v48  ;;  %v996_v59 = vand.u32 2147483647, %v986_v48  ;;  %vm992_vm6 = vweird.f32 %v986_v48 }
 0xaea   :  { %1910 = vtanh.f32 %v982_v53 }
 0xaeb   :  { %v999_v7 = vor.u32 1.1754944e-38, %v998_v56  ;;  %vm997_vm9 = vcmp.eq.f32.partialorder %v996_v59, 8.507059e+37  ;;  %1912 = vpow2.f32 %v1793_v8  ;;  %v1224_v59 = vld [vmem:[%s2761_s8 + $0x110] sm:$0xff]  ;;  %v1215_v8 = vld [vmem:[%s2761_s8 + $0xc8] sm:$0xff] }
 0xaec   :  { %1262 = vmatpush.msrb.mxu2 %v1224_v59 }
 0xaef   :  { %v1909_v52 = vpop.eup %1908 }
 0xaf0   :  { %v988_v54 = vmul.f32 %v1909_v52, %v986_v48  ;;  %vm993_vm4 = vweird.f32 %v1909_v52  ;;  %v1911_v0 = vpop.eup %1910 }
 0xaf1   :  { %vm994_vm7 = vmor %vm992_vm6, %vm993_vm4  ;;  %v1913_v12 = vpop.eup %1912 }
 0xaf2   :  { %v989_v55 = vsub.f32 1.0, %v988_v54  ;;  %v1006_v13 = vadd.f32 1.0, %v1913_v12 }
 0xaf4   :  { %v990_v58 = vmul.f32 %v1909_v52, %v989_v55  ;;  %1914 = vrcp.f32 %v1006_v13  ;;  %v1018_v19 = vand.u32 2147483648, %v1006_v13  ;;  %vm1012_vm12 = vweird.f32 %v1006_v13 }
 0xaf5   :  { %v1016_v21 = vand.u32 2147483647, %v1006_v13 }
 0xaf6   :  { %v991_v57 = vadd.f32 %v1909_v52, %v990_v58  ;;  %v1019_v5 = vor.u32 1.1754944e-38, %v1018_v19  ;;  %v1223_v58 = vld [vmem:[%s2761_s8 + $0x108] sm:$0xff]  ;;  %v1205_v19 = vld [vmem:[%s2761_s8 + $0x78] sm:$0xff] }
 0xaf7   :  { %vm1017_vm15 = vcmp.eq.f32.partialorder %v1016_v21, 8.507059e+37  ;;  %1242 = vmatpush.msrb.mxu1 %v1223_v58  ;;  %v1206_v21 = vld [vmem:[%s2761_s8 + $0x80] sm:$0xff]  ;;  %v1192_v58 = vld [vmem:[%s2761_s8 + $0x10] sm:$0xff] }
 0xaf8   :  { %v995_v62 = vsel %vm994_vm7, %v1909_v52, %v991_v57  ;;  %v1225_v57 = vld [vmem:[%s2761_s8 + $0x118] sm:$0xff] }
 0xaf9   :  { %v1000_v60 = vsel %vm997_vm9, %v999_v7, %v995_v62  ;;  %v1222_v62 = vld [vmem:[%s2761_s8 + $0x100] sm:$0xff]  ;;  %1282 = vmatpush.msrb.mxu3 %v1225_v57 }
 0xafa   :  { %v1026_v2 = vmul.f32 %v1911_v0, %v1000_v60  ;;  %v1025_v3 = vmul.f32 %v1023_v61, %v1000_v60  ;;  %v1915_v14 = vpop.eup %1914  ;;  %v1221_v61 = vld [vmem:[%s2761_s8 + $0xf8] sm:$0xff]  ;;  %v1218_v60 = vld [vmem:[%s2761_s8 + $0xe0] sm:$0xff] }
 0xafb   :  { %v1008_v15 = vmul.f32 %v1915_v14, %v1006_v13  ;;  %vm1013_vm10 = vweird.f32 %v1915_v14  ;;  %v1217_v0 = vld [vmem:[%s2761_s8 + $0xd8] sm:$0xff]  ;;  %1263 = vmatpush.msrb.mxu2 %v1221_v61  ;;  %1283 = vmatpush.msrb.mxu3 %v1222_v62  ;;  %v1216_v13 = vld [vmem:[%s2761_s8 + $0xd0] sm:$0xff]  ;;  %v1226_v62 = vld [vmem:[%s2762_s9] sm:$0x7]  ;;  %s2084_s9 = smov 32  }
 0xafc   :  { %1028 = vrot.lane.b32.xlu0 %v1026_v2, %s2082_s6  ;;  %vm1014_vm14 = vmor %vm1012_vm12, %vm1013_vm10  ;;  %v1219_v2 = vld [vmem:[%s2761_s8 + $0xe8] sm:$0xff] }
 0xafd   :  { %v1009_v18 = vsub.f32 1.0, %v1008_v15  ;;  %1264 = vmatpush.msrb.mxu2 %v1218_v60  ;;  %1284 = vmatpush.msrb.mxu3 %v1219_v2  ;;  %v1212_v15 = vld [vmem:[%s2761_s8 + $0xb0] sm:$0xff]  ;;  %v1230_v60 = vperm.slane %v1226_v62, 2  ;;  %v1228_v2 = vperm.slane %v1226_v62, 0 }
 0xaff   :  { %v1010_v6 = vmul.f32 %v1915_v14, %v1009_v18  ;;  %1265 = vmatpush.msrb.mxu2 %v1215_v8  ;;  %v1213_v18 = vld [vmem:[%s2761_s8 + $0xb8] sm:$0xff]  ;;  %1285 = vmatpush.msrb.mxu3 %v1216_v13 }
 0xb01   :  { %v1011_v22 = vadd.f32 %v1915_v14, %v1010_v6  ;;  %v1208_v6 = vld [vmem:[%s2761_s8 + $0x90] sm:$0xff]  ;;  %1266 = vmatpush.msrb.mxu2 %v1212_v15  ;;  %1286 = vmatpush.msrb.mxu3 %v1213_v18 }
 0xb03   :  { %v1015_v23 = vsel %vm1014_vm14, %v1915_v14, %v1011_v22  ;;  %v1211_v14 = vld [vmem:[%s2761_s8 + $0xa8] sm:$0xff]  ;;  %v1210_v22 = vld [vmem:[%s2761_s8 + $0xa0] sm:$0xff] }
 0xb04   :  { %v1020_v26 = vsel %vm1017_vm15, %v1019_v5, %v1015_v23  ;;  %v1207_v5 = vld [vmem:[%s2761_s8 + $0x88] sm:$0xff]  ;;  %1287 = vmatpush.msrb.mxu3 %v1210_v22 }
 0xb06   :  { %1288 = vmatpush.msrb.mxu3 %v1207_v5 }
 0xb6e   :  { %v1029_v20 = vpop.permute.xlu0 %1028 }
 0xb6f   :  { %v1031_v25 = vadd.f32 %v1029_v20, %v1025_v3  ;;  %v1214_v3 = vld [vmem:[%s2761_s8 + $0xc0] sm:$0xff]  ;;  %v1209_v20 = vld [vmem:[%s2761_s8 + $0x98] sm:$0xff] }
 0xb70   :  { %1267 = vmatpush.msrb.mxu2 %v1209_v20 }
 0xb71   :  { %1916 = vtanh.f32 %v1031_v25  ;;  %v1128_v47 = vrot.slane %v1031_v25, 7 }
 0xb72   :  { %1268 = vmatpush.msrb.mxu2 %v1206_v21 }
 0xb77   :  { %v1917_v24 = vpop.eup %1916 }
 0xb78   :  { %v2496_v27 = vmul.f32 %v1917_v24, %v1020_v26 }
 0xb7a   :  { %v1035_v28 = vrot.slane %v2496_v27, 6  ;;  %v2502_v4 = vsel %vm1149_vm2, %v2488_v40, %v2496_v27 }
 0xb7c   :  { %1036 = vrot.lane.b32.xlu1 %v1035_v28, %s2082_s6 }
 0xbee   :  { %v1037_v29 = vpop.permute.xlu1 %1036 }
 0xbef   :  { %1794 = vmatmul.msk.f32.vlgmr.msra.gmra.mxu3 %vm140_vm0, %v1037_v29  ;;  %1795 = vmatmul.msk.f32.vlgmr.msra.gmra.mxu0 %vm140_vm0, %v1037_v29 }
 0xc6c   :  { %v1077_v36 = vpop.f32.mrf.mxu0 }
 0xc6d   :  { %v1083_v34 = vrot.slane %v1077_v36, 1 }
 0xc6f   :  { %v1087_v39 = vadd.f32 %v1083_v34, %v2351_v9 }
 0xc71   :  { %v1797_v9 = vmul.f32 -1.442695, %v1087_v39 }
 0xc72   :  { %v1057_v30 = vpop.f32.mrf.mxu3 }
 0xc73   :  { %v1082_v31 = vrot.slane %v1057_v30, 1 }
 0xc75   :  { %v1086_v33 = vadd.f32 %v1082_v31, %v2353_v10 }
 0xc77   :  { %v1796_v32 = vmul.f32 -1.442695, %v1086_v33 }
 0xc79   :  { %1918 = vpow2.f32 %v1796_v32 }
 0xc7f   :  { %v1919_v35 = vpop.eup %1918 }
 0xc80   :  { %v1091_v16 = vadd.f32 1.0, %v1919_v35 }
 0xc82   :  { %1920 = vrcp.f32 %v1091_v16  ;;  %v1103_v43 = vand.u32 2147483648, %v1091_v16  ;;  %v1101_v45 = vand.u32 2147483647, %v1091_v16  ;;  %vm1097_vm6 = vweird.f32 %v1091_v16 }
 0xc83   :  { %1922 = vtanh.f32 %v1087_v39  ;;  %v1160_v39 = vrot.slane %v2468_v51, 1 }
 0xc84   :  { %v1104_v10 = vor.u32 1.1754944e-38, %v1103_v43  ;;  %vm1102_vm9 = vcmp.eq.f32.partialorder %v1101_v45, 8.507059e+37  ;;  %1924 = vpow2.f32 %v1797_v9  ;;  %v1166_v45 = vrot.slane %v2392_v11, 3  ;;  %v1203_v11 = vld [vmem:[%s2761_s8 + $0x68] sm:$0xff]  ;;  %v1194_v9 = vld [vmem:[%s2761_s8 + $0x20] sm:$0xff] }
 0xc85   :  { %1269 = vmatpush.msrb.mxu2 %v1203_v11 }
 0xc88   :  { %v1921_v37 = vpop.eup %1920 }
 0xc89   :  { %v1093_v40 = vmul.f32 %v1921_v37, %v1091_v16  ;;  %vm1098_vm4 = vweird.f32 %v1921_v37  ;;  %v1923_v49 = vpop.eup %1922  ;;  %v1156_v16 = vrot.slane %v2496_v27, 5 }
 0xc8a   :  { %vm1099_vm7 = vmor %vm1097_vm6, %vm1098_vm4  ;;  %v1925_v54 = vpop.eup %1924  ;;  %vm1151_vm4 = vcmask 1046528  }
 0xc8b   :  { %v1094_v41 = vsub.f32 1.0, %v1093_v40  ;;  %v1111_v55 = vadd.f32 1.0, %v1925_v54  ;;  %v1195_v54 = vld [vmem:[%s2761_s8 + $0x28] sm:$0xff] }
 0xc8d   :  { %v1095_v44 = vmul.f32 %v1921_v37, %v1094_v41  ;;  %1926 = vrcp.f32 %v1111_v55  ;;  %v1123_v28 = vand.u32 2147483648, %v1111_v55  ;;  %vm1117_vm12 = vweird.f32 %v1111_v55 }
 0xc8e   :  { %v1121_v29 = vand.u32 2147483647, %v1111_v55  ;;  %v1162_v41 = vrot.slane %v2454_v63, 7  ;;  %v1199_v63 = vld [vmem:[%s2761_s8 + $0x48] sm:$0xff] }
 0xc8f   :  { %v1096_v46 = vadd.f32 %v1921_v37, %v1095_v44  ;;  %v1124_v31 = vor.u32 1.1754944e-38, %v1123_v28  ;;  %v1164_v44 = vrot.slane %v2421_v17, 5  ;;  %v1202_v17 = vld [vmem:[%s2761_s8 + $0x60] sm:$0xff] }
 0xc90   :  { %vm1122_vm15 = vcmp.eq.f32.partialorder %v1121_v29, 8.507059e+37 }
 0xc91   :  { %v1100_v48 = vsel %vm1099_vm7, %v1921_v37, %v1096_v46  ;;  %v1158_v37 = vrot.slane %v2482_v38, 3  ;;  %v1168_v38 = vrot.slane %v2363_v1, 1  ;;  %v1204_v1 = vld [vmem:[%s2761_s8 + $0x70] sm:$0xff] }
 0xc92   :  { %v1105_v50 = vsel %vm1102_vm9, %v1104_v10, %v1100_v48  ;;  %v1201_v48 = vld [vmem:[%s2761_s8 + $0x58] sm:$0xff]  ;;  %1289 = vmatpush.msrb.mxu3 %v1204_v1 }
 0xc93   :  { %v1131_v52 = vmul.f32 %v1923_v49, %v1105_v50  ;;  %v1130_v53 = vmul.f32 %v1128_v47, %v1105_v50  ;;  %v1927_v56 = vpop.eup %1926  ;;  %v1200_v47 = vld [vmem:[%s2761_s8 + $0x50] sm:$0xff]  ;;  %v1197_v50 = vld [vmem:[%s2761_s8 + $0x38] sm:$0xff] }
 0xc94   :  { %v1113_v7 = vmul.f32 %v1927_v56, %v1111_v55  ;;  %vm1118_vm10 = vweird.f32 %v1927_v56  ;;  %v1196_v49 = vld [vmem:[%s2761_s8 + $0x30] sm:$0xff]  ;;  %1270 = vmatpush.msrb.mxu2 %v1200_v47  ;;  %1290 = vmatpush.msrb.mxu3 %v1201_v48  ;;  %v1190_v55 = vld [vmem:[%s2761_s8] sm:$0xff] }
 0xc95   :  { %1133 = vrot.lane.b32.xlu2 %v1131_v52, %s2082_s6  ;;  %vm1119_vm14 = vmor %vm1117_vm12, %vm1118_vm10  ;;  %v1198_v52 = vld [vmem:[%s2761_s8 + $0x40] sm:$0xff] }
 0xc96   :  { %v1114_v12 = vsub.f32 1.0, %v1113_v7  ;;  %1271 = vmatpush.msrb.mxu2 %v1197_v50  ;;  %1291 = vmatpush.msrb.mxu3 %v1198_v52 }
 0xc98   :  { %v1115_v25 = vmul.f32 %v1927_v56, %v1114_v12  ;;  %1272 = vmatpush.msrb.mxu2 %v1194_v9  ;;  %1292 = vmatpush.msrb.mxu3 %v1195_v54 }
 0xc9a   :  { %v1116_v26 = vadd.f32 %v1927_v56, %v1115_v25  ;;  %1293 = vmatpush.msrb.mxu3 %v1192_v58 }
 0xc9c   :  { %v1120_v30 = vsel %vm1119_vm14, %v1927_v56, %v1116_v26  ;;  %v1191_v56 = vld [vmem:[%s2761_s8 + $0x8] sm:$0xff] }
 0xc9d   :  { %1185 = vrot.lane.b32.xlu2 %v2298_v42, %s2082_s6  ;;  %v1220_v42 = vld [vmem:[%s2761_s8 + $0xf0] sm:$0xff]  ;;  %v1125_v32 = vsel %vm1122_vm15, %v1124_v31, %v1120_v30  ;;  %1273 = vmatpush.msrb.mxu2 %v1191_v56 }
 0xc9e   :  { %1243 = vmatpush.msrb.mxu1 %v1220_v42 }
 0xca0   :  { %1244 = vmatpush.msrb.mxu1 %v1217_v0  ;;  %v1229_v0 = vperm.slane %v1226_v62, 1 }
 0xca2   :  { %1245 = vmatpush.msrb.mxu1 %v1214_v3 }
 0xca4   :  { %1246 = vmatpush.msrb.mxu1 %v1211_v14 }
 0xca6   :  { %1247 = vmatpush.msrb.mxu1 %v1208_v6 }
 0xca8   :  { %1248 = vmatpush.msrb.mxu1 %v1205_v19 }
 0xcaa   :  { %1249 = vmatpush.msrb.mxu1 %v1202_v17 }
 0xcac   :  { %1250 = vmatpush.msrb.mxu1 %v1199_v63 }
 0xcae   :  { %1251 = vmatpush.msrb.mxu1 %v1196_v49 }
 0xcef   :  { %v1134_v23 = vpop.permute.xlu2 %1133 }
 0xcf0   :  { %v1136_v24 = vadd.f32 %v1134_v23, %v1130_v53  ;;  %v1193_v53 = vld [vmem:[%s2761_s8 + $0x18] sm:$0xff]  ;;  %s2083_s8 = smov 96  }
 0xcf1   :  { %1252 = vmatpush.msrb.mxu1 %v1193_v53 }
 0xcf2   :  { %1928 = vtanh.f32 %v1136_v24 }
 0xcf3   :  { %1253 = vmatpush.msrb.mxu1 %v1190_v55 }
 0xcf7   :  { %v1186_v7 = vpop.permute.xlu2 %1185 }
 0xcf8   :  { %v1929_v33 = vpop.eup %1928 }
 0xcf9   :  { %v1138_v35 = vmul.f32 %v1929_v33, %v1125_v32 }
 0xcfb   :  { %v1152_v36 = vsel %vm1151_vm4, %v2502_v4, %v1138_v35  ;;  %v1154_v34 = vrot.slane %v1138_v35, 7 }
 0xcfc   :  { %1178 = vrot.lane.b32.xlu0 %v1152_v36, %s2082_s6 }
 0xcfd   :  { %v1170_v40 = vsel %vm1139_vm11, %v1154_v34, %v1156_v16  ;;  %vm1234_vm11 = vcmask 785408  }
 0xcfe   :  { %v1171_v43 = vsel %vm1141_vm13, %v1170_v40, %v1158_v37  ;;  %vm1324_vm13 = vcmask 64512  }
 0xcff   :  { %v1172_v27 = vsel %vm1143_vm8, %v1171_v43, %v1160_v39 }
 0xd00   :  { %v1173_v4 = vsel %vm1145_vm5, %v1172_v27, %v1162_v41 }
 0xd01   :  { %v1174_v46 = vsel %vm1147_vm3, %v1173_v4, %v1164_v44 }
 0xd02   :  { %v1175_v51 = vsel %vm1149_vm2, %v1174_v46, %v1166_v45 }
 0xd03   :  { %v1176_v10 = vsel %vm1151_vm4, %v1175_v51, %v1168_v38 }
 0xd04   :  { %1182 = vrot.lane.b32.xlu1 %v1176_v10, %s2082_s6 }
 0xd6e   :  { %v1179_v59 = vpop.permute.xlu0 %1178 }
 0xd76   :  { %v1183_v57 = vpop.permute.xlu1 %1182 }
 0xd77   :  { %v1188_v42 = vsel %vm172_vm1, %v1179_v59, %v1183_v57  ;;  %v1585_v57 = vld [vmem:[%s2763_s10 + $0x78] sm:$0xff] }
 0xd78   :  { %v1189_v61 = vsel %vm140_vm0, %v1188_v42, %v1186_v7  ;;  %v1584_v7 = vld [vmem:[%s2763_s10 + $0x70] sm:$0xff]  ;;  %v1583_v42 = vld [vmem:[%s2763_s10 + $0x68] sm:$0xff] }
 0xd79   :  { %1798 = vmatmul.msk.f32.vlgmr.msrb.gmra.mxu1 %vm1234_vm11, %v1189_v61  ;;  %1799 = vmatmul.msk.f32.vlgmr.msrb.gmra.mxu2 %vm1234_vm11, %v1189_v61 }
 0xd7a   :  { %1800 = vmatmul.msk.f32.vlgmr.msrb.gmra.mxu3 %vm1234_vm11, %v1189_v61  ;;  %v1582_v61 = vld [vmem:[%s2763_s10 + $0x60] sm:$0xff] }
 0xdf6   :  { %v1255_v8 = vpop.f32.mrf.mxu1 }
 0xdf7   :  { %v1256_v15 = vadd.f32 %v1255_v8, %v1228_v2  ;;  %v1579_v2 = vld [vmem:[%s2763_s10 + $0x48] sm:$0xff] }
 0xdfc   :  { %v1275_v3 = vpop.f32.mrf.mxu2 }
 0xdfd   :  { %v1276_v12 = vadd.f32 %v1275_v3, %v1229_v0  ;;  %v1295_v13 = vpop.f32.mrf.mxu3  ;;  %v1581_v0 = vld [vmem:[%s2763_s10 + $0x58] sm:$0xff]  ;;  %v1578_v3 = vld [vmem:[%s2763_s10 + $0x40] sm:$0xff] }
 0xdfe   :  { %v2646_v14 = vadd.f32 %v1295_v13, %v1230_v60  ;;  %v1580_v60 = vld [vmem:[%s2763_s10 + $0x50] sm:$0xff] }
 0xdff   :  { %1427 = vrot.lane.b32.xlu2 %v1276_v12, %s2082_s6  ;;  %1801 = vmatpush.xpose.msk.msrb.mxu0 %vm172_vm1, %v1276_v12  ;;  %v1576_v13 = vld [vmem:[%s2763_s10 + $0x30] sm:$0xff] }
 0xe02   :  { %1802 = vmatmul.msk.f32.vlgmr.msrb.gmra.mxu0 %vm172_vm1, %v1256_v15 }
 0xe03   :  { %1354 = vmatpush.msra.mxu0 %v2646_v14 }
 0xe07   :  { %1425 = vrot.lane.b32.xlu2 %v1256_v15, %s2082_s6 }
 0xe0f   :  { %1361 = vrot.lane.b32.xlu2 %v1276_v12, %s2083_s8 }
 0xe17   :  { %1359 = vrot.lane.b32.xlu2 %v1256_v15, %s2083_s8 }
 0xe1f   :  { %1492 = vrot.lane.b32.xlu2 %v1276_v12, %s2084_s9  ;;  %v1577_v12 = vld [vmem:[%s2763_s10 + $0x38] sm:$0xff] }
 0xe27   :  { %1490 = vrot.lane.b32.xlu2 %v1256_v15, %s2084_s9 }
 0xe59   :  { %v1428_v18 = vpop.permute.xlu2 %1427 }
 0xe5a   :  { %1807 = vmatpush.xpose.msk.msra.mxu2 %vm172_vm1, %v1428_v18  ;;  %v1574_v18 = vld [vmem:[%s2763_s10 + $0x20] sm:$0xff] }
 0xe5e   :  { %1590 = vmatpush.msrb.mxu2 %v1585_v57  ;;  %v1830_v57 = vld [vmem:[%s2764_s11] ss:$0 sm:$0xff] }
 0xe60   :  { %1591 = vmatpush.msrb.mxu2 %v1584_v7 }
 0xe61   :  { %v1426_v6 = vpop.permute.xlu2 %1425 }
 0xe62   :  { %1808 = vmatmul.msk.f32.vlgmr.msra.gmra.mxu2 %vm172_vm1, %v1426_v6  ;;  %v1573_v6 = vld [vmem:[%s2763_s10 + $0x18] sm:$0xff] }
 0xe63   :  { %1592 = vmatpush.msrb.mxu2 %v1583_v42 }
 0xe65   :  { %1593 = vmatpush.msrb.mxu2 %v1582_v61  ;;  %v1690_v61 = vld [vmem:[#allocation9 + $0x28] sm:$0xff] }
 0xe67   :  { %1594 = vmatpush.msrb.mxu2 %v1581_v0  ;;  %v1689_v0 = vld [vmem:[#allocation9 + $0x20] sm:$0xff] }
 0xe69   :  { %v1362_v20 = vpop.permute.xlu2 %1361  ;;  %1595 = vmatpush.msrb.mxu2 %v1580_v60  ;;  %v1702_v60 = vld [vmem:[#allocation9 + $0x88] sm:$0xff] }
 0xe6a   :  { %1804 = vmatpush.xpose.msk.msrb.mxu0 %vm172_vm1, %v1362_v20  ;;  %v1572_v20 = vld [vmem:[%s2763_s10 + $0x10] sm:$0xff] }
 0xe6b   :  { %1596 = vmatpush.msrb.mxu2 %v1579_v2  ;;  %v1688_v2 = vld [vmem:[#allocation9 + $0x18] sm:$0xff] }
 0xe6d   :  { %1597 = vmatpush.msrb.mxu2 %v1578_v3  ;;  %v1701_v3 = vld [vmem:[#allocation9 + $0x80] sm:$0xff] }
 0xe6f   :  { %1598 = vmatpush.msrb.mxu2 %v1577_v12  ;;  %v1686_v12 = vld [vmem:[#allocation9 + $0x8] sm:$0xff] }
 0xe71   :  { %v1360_v29 = vpop.permute.xlu2 %1359  ;;  %1599 = vmatpush.msrb.mxu2 %v1576_v13  ;;  %v1685_v13 = vld [vmem:[#allocation9] sm:$0xff] }
 0xe79   :  { %v1493_v16 = vpop.permute.xlu2 %1492 }
 0xe7f   :  { %v1321_v25 = vpop.f32.mrf.mxu0 }
 0xe80   :  { %v1325_v22 = vsel %vm1324_vm13, %v1321_v25, -inf }
 0xe81   :  { %1326 = vmax.xlane.f32.xlu0 %v1325_v22  ;;  %v1491_v39 = vpop.permute.xlu2 %1490  ;;  %v1570_v22 = vld [vmem:[%s2763_s10] sm:$0xff] }
 0xee5   :  { %v1450_v26 = vpop.f32.mrf.mxu2 }
 0xee6   :  { %v1453_v28 = vsel %vm1324_vm13, %v1450_v26, -inf }
 0xef4   :  { %v1327_v19 = vpop.xlane.xlu0 %1326 }
 0xef5   :  { %v1328_v21 = vsub.f32 %v1321_v25, %v1327_v19  ;;  %v1571_v25 = vld [vmem:[%s2763_s10 + $0x8] sm:$0xff]  ;;  %v1632_v19 = vld [vmem:[#allocation7 + $0xb0] sm:$0xff] }
 0xef7   :  { %v1329_v23 = vmul.f32 1.442695, %v1328_v21  ;;  %v1633_v21 = vld [vmem:[#allocation7 + $0xb8] sm:$0xff] }
 0xef9   :  { %1930 = vpow2.f32 %v1329_v23  ;;  %v1630_v23 = vld [vmem:[#allocation7 + $0xa0] sm:$0xff] }
 0xeff   :  { %v1931_v5 = vpop.eup %1930 }
 0xf00   :  { %v1331_v24 = vsel %vm1324_vm13, %v1931_v5, 0.0 }
 0xf01   :  { %1332 = vadd.xlane.f32.xlu1 %v1331_v24  ;;  %v1628_v24 = vld [vmem:[#allocation7 + $0x90] sm:$0xff] }
 0xf09   :  { %1454 = vmax.xlane.f32.xlu1 %v1453_v28  ;;  %v1626_v28 = vld [vmem:[#allocation7 + $0x80] sm:$0xff] }
 0xf74   :  { %v1333_v30 = vpop.xlane.xlu1 %1332 }
 0xf75   :  { %1932 = vrcp.f32 %v1333_v30  ;;  %v1624_v30 = vld [vmem:[#allocation7 + $0x70] sm:$0xff] }
 0xf7b   :  { %v1933_v31 = vpop.eup %1932 }
 0xf7c   :  { %v1335_v33 = vmul.f32 %v1933_v31, %v1931_v5  ;;  %v1455_v32 = vpop.xlane.xlu1 %1454  ;;  %v1631_v5 = vld [vmem:[#allocation7 + $0xa8] sm:$0xff]  ;;  %v1625_v31 = vld [vmem:[#allocation7 + $0x78] sm:$0xff] }
 0xf7d   :  { %v1456_v35 = vsub.f32 %v1450_v26, %v1455_v32  ;;  %v1629_v26 = vld [vmem:[#allocation7 + $0x98] sm:$0xff]  ;;  %v1623_v32 = vld [vmem:[#allocation7 + $0x68] sm:$0xff] }
 0xf7e   :  { %1803 = vmatmul.msk.f32.vlgmr.msra.gmra.mxu0 %vm1324_vm13, %v1335_v33  ;;  %v1622_v33 = vld [vmem:[#allocation7 + $0x60] sm:$0xff] }
 0xf7f   :  { %v1457_v36 = vmul.f32 1.442695, %v1456_v35  ;;  %1810 = vmatpush.xpose.msk.msra.mxu0 %vm172_vm1, %v1493_v16  ;;  %v1620_v35 = vld [vmem:[#allocation7 + $0x50] sm:$0xff]  ;;  %v1621_v16 = vld [vmem:[#allocation7 + $0x58] sm:$0xff] }
 0xf81   :  { %1934 = vpow2.f32 %v1457_v36  ;;  %v1618_v36 = vld [vmem:[#allocation7 + $0x40] sm:$0xff] }
 0xf86   :  { %1805 = vmatmul.msk.f32.vlgmr.msrb.gmra.mxu0 %vm172_vm1, %v1360_v29  ;;  %v1627_v29 = vld [vmem:[#allocation7 + $0x88] sm:$0xff] }
 0xf87   :  { %v1935_v34 = vpop.eup %1934  ;;  %1667 = vmatpush.msrb.mxu0 %v1633_v21 }
 0xf88   :  { %v1459_v37 = vsel %vm1324_vm13, %v1935_v34, 0.0 }
 0xf89   :  { %1460 = vadd.xlane.f32.xlu1 %v1459_v37  ;;  %1668 = vmatpush.msrb.mxu0 %v1631_v5  ;;  %v1616_v37 = vld [vmem:[#allocation7 + $0x30] sm:$0xff] }
 0xf8b   :  { %1669 = vmatpush.msrb.mxu0 %v1629_v26 }
 0xf8d   :  { %1670 = vmatpush.msrb.mxu0 %v1627_v29 }
 0xf8e   :  { %1811 = vmatmul.msk.f32.vlgmr.msra.gmra.mxu0 %vm172_vm1, %v1491_v39  ;;  %v1617_v39 = vld [vmem:[#allocation7 + $0x38] sm:$0xff] }
 0xf8f   :  { %1671 = vmatpush.msrb.mxu0 %v1625_v31 }
 0xf91   :  { %1672 = vmatpush.msrb.mxu0 %v1623_v32 }
 0xf93   :  { %1673 = vmatpush.msrb.mxu0 %v1621_v16 }
 0xfa2   :  { %1399 = vrot.lane.b32.xlu1 %v2646_v14, %s2083_s8 }
 0xfaa   :  { %1529 = vrot.lane.b32.xlu1 %v2646_v14, %s2084_s9 }
 0xffb   :  { %v2672_v40 = vpop.f32.mrf.mxu0 }
 0xffc   :  { %v1461_v27 = vpop.xlane.xlu1 %1460 }
0x1003   :  { %v1384_v41 = vpop.f32.mrf.mxu0 }
0x1004   :  { %v1387_v43 = vsel %vm1324_vm13, %v1384_v41, -inf }
0x1005   :  { %1388 = vmax.xlane.f32.xlu0 %v1387_v43  ;;  %v1615_v43 = vld [vmem:[#allocation7 + $0x28] sm:$0xff] }
0x100b   :  { %v1515_v44 = vpop.f32.mrf.mxu0 }
0x100c   :  { %v1518_v45 = vsel %vm1324_vm13, %v1515_v44, -inf }
0x100d   :  { %1519 = vmax.xlane.f32.xlu2 %v1518_v45 }
0x1014   :  { %v1400_v4 = vpop.permute.xlu1 %1399 }
0x1015   :  { %1420 = vmatpush.msra.mxu1 %v1400_v4 }
0x101c   :  { %v1530_v38 = vpop.permute.xlu1 %1529 }
0x101d   :  { %1550 = vmatpush.msrb.mxu1 %v1530_v38 }
0x1078   :  { %v1389_v46 = vpop.xlane.xlu0 %1388 }
0x1079   :  { %v1390_v51 = vsub.f32 %v1384_v41, %v1389_v46  ;;  %v1614_v41 = vld [vmem:[#allocation7 + $0x20] sm:$0xff] }
0x107b   :  { %v1391_v10 = vmul.f32 1.442695, %v1390_v51  ;;  %v1612_v51 = vld [vmem:[#allocation7 + $0x10] sm:$0xff] }
0x107d   :  { %1936 = vpow2.f32 %v1391_v10  ;;  %v1613_v10 = vld [vmem:[#allocation7 + $0x18] sm:$0xff] }
0x1080   :  { %v1520_v17 = vpop.xlane.xlu2 %1519 }
0x1081   :  { %v1521_v11 = vsub.f32 %v1515_v44, %v1520_v17  ;;  %v1610_v17 = vld [vmem:[#allocation7] sm:$0xff] }
0x1083   :  { %v1937_v1 = vpop.eup %1936  ;;  %v1522_v63 = vmul.f32 1.442695, %v1521_v11  ;;  %v1611_v11 = vld [vmem:[#allocation7 + $0x8] sm:$0xff] }
0x1084   :  { %v1393_v47 = vsel %vm1324_vm13, %v1937_v1, 0.0 }
0x1085   :  { %1938 = vpow2.f32 %v1522_v63  ;;  %1394 = vadd.xlane.f32.xlu0 %v1393_v47  ;;  %v1699_v63 = vld [vmem:[#allocation9 + $0x70] sm:$0xff]  ;;  %v1698_v47 = vld [vmem:[#allocation9 + $0x68] sm:$0xff] }
0x108b   :  { %v1939_v48 = vpop.eup %1938 }
0x108c   :  { %v1524_v49 = vsel %vm1324_vm13, %v1939_v48, 0.0 }
0x108d   :  { %1525 = vadd.xlane.f32.xlu0 %v1524_v49  ;;  %v1697_v49 = vld [vmem:[#allocation9 + $0x60] sm:$0xff] }
0x10a1   :  { %1464 = vrot.lane.b32.xlu0 %v2646_v14, %s2082_s6  ;;  %v1575_v14 = vld [vmem:[%s2763_s10 + $0x28] sm:$0xff] }
0x10a2   :  { %1600 = vmatpush.msrb.mxu2 %v1575_v14  ;;  %v1634_v14 = vld [vmem:[%s2766_s13] sm:$0x3] }
0x10a4   :  { %1601 = vmatpush.msrb.mxu2 %v1574_v18 }
0x10a6   :  { %1602 = vmatpush.msrb.mxu2 %v1573_v6 }
0x10a8   :  { %1603 = vmatpush.msrb.mxu2 %v1572_v20 }
0x10aa   :  { %1604 = vmatpush.msrb.mxu2 %v1571_v25  ;;  %v1636_v25 = vperm.slane %v1634_v14, 0 }
0x10ac   :  { %1605 = vmatpush.msrb.mxu2 %v1570_v22 }
0x10f8   :  { %v1395_v50 = vpop.xlane.xlu0 %1394 }
0x10f9   :  { %1940 = vrcp.f32 %v1395_v50  ;;  %v1706_v50 = vld [vmem:[#allocation9 + $0xa8] sm:$0xff] }
0x10ff   :  { %v1941_v52 = vpop.eup %1940 }
0x1100   :  { %v1397_v53 = vmul.f32 %v1941_v52, %v1937_v1  ;;  %v1526_v9 = vpop.xlane.xlu0 %1525  ;;  %v1700_v1 = vld [vmem:[#allocation9 + $0x78] sm:$0xff] }
0x1101   :  { %1942 = vrcp.f32 %v1526_v9  ;;  %v1696_v52 = vld [vmem:[#allocation9 + $0x58] sm:$0xff]  ;;  %v1695_v9 = vld [vmem:[#allocation9 + $0x50] sm:$0xff] }
0x1102   :  { %1806 = vmatmul.msk.f32.vlgmr.msra.gmra.mxu1 %vm1324_vm13, %v1397_v53  ;;  %1944 = vrcp.f32 %v1461_v27  ;;  %v1705_v53 = vld [vmem:[#allocation9 + $0xa0] sm:$0xff] }
0x1103   :  { %1716 = vmatpush.msra.mxu1 %v1700_v1 }
0x1105   :  { %1717 = vmatpush.msra.mxu1 %v1699_v63 }
0x1107   :  { %v1943_v54 = vpop.eup %1942  ;;  %1718 = vmatpush.msra.mxu1 %v1698_v47 }
0x1108   :  { %v1528_v55 = vmul.f32 %v1943_v54, %v1939_v48  ;;  %v1945_v56 = vpop.eup %1944  ;;  %v1707_v48 = vld [vmem:[#allocation9 + $0xb0] sm:$0xff]  ;;  %v1704_v54 = vld [vmem:[#allocation9 + $0x98] sm:$0xff] }
0x1109   :  { %v1463_v58 = vmul.f32 %v1945_v56, %v1935_v34  ;;  %v1619_v34 = vld [vmem:[#allocation7 + $0x48] sm:$0xff]  ;;  %1719 = vmatpush.msra.mxu1 %v1697_v49  ;;  %v1693_v56 = vld [vmem:[#allocation9 + $0x40] sm:$0xff] }
0x110a   :  { %1812 = vmatmul.msk.f32.vlgmr.msrb.gmra.mxu1 %vm1324_vm13, %v1528_v55  ;;  %1674 = vmatpush.msrb.mxu0 %v1619_v34  ;;  %v1694_v55 = vld [vmem:[#allocation9 + $0x48] sm:$0xff] }
0x110b   :  { %1720 = vmatpush.msra.mxu1 %v1696_v52 }
0x110c   :  { %1675 = vmatpush.msrb.mxu0 %v1617_v39 }
0x110d   :  { %1721 = vmatpush.msra.mxu1 %v1695_v9 }
0x110e   :  { %1676 = vmatpush.msrb.mxu0 %v1615_v43 }
0x110f   :  { %1722 = vmatpush.msra.mxu1 %v1694_v55 }
0x1110   :  { %1677 = vmatpush.msrb.mxu0 %v1613_v10 }
0x1111   :  { %1723 = vmatpush.msra.mxu1 %v1693_v56 }
0x1112   :  { %1678 = vmatpush.msrb.mxu0 %v1611_v11 }
0x1113   :  { %v1465_v59 = vpop.permute.xlu0 %1464 }
0x1114   :  { %1485 = vmatpush.msra.mxu3 %v1465_v59  ;;  %v1691_v59 = vld [vmem:[#allocation9 + $0x30] sm:$0xff] }
0x1115   :  { %1809 = vmatmul.msk.f32.vlgmr.msra.gmra.mxu3 %vm1324_vm13, %v1463_v58  ;;  %v1692_v58 = vld [vmem:[#allocation9 + $0x38] sm:$0xff] }
0x1116   :  { %1647 = vmatpush.msrb.mxu3 %v1632_v19  ;;  %1724 = vmatpush.msra.mxu1 %v1692_v58 }
0x1118   :  { %1648 = vmatpush.msrb.mxu3 %v1630_v23  ;;  %1725 = vmatpush.msra.mxu1 %v1691_v59  ;;  %v1831_v23 = vld [vmem:[%s2768_s15] ss:$0 sm:$0xff] }
0x111a   :  { %1649 = vmatpush.msrb.mxu3 %v1628_v24  ;;  %1726 = vmatpush.msra.mxu1 %v1690_v61 }
0x111c   :  { %1650 = vmatpush.msrb.mxu3 %v1626_v28  ;;  %1727 = vmatpush.msra.mxu1 %v1689_v0 }
0x111e   :  { %1651 = vmatpush.msrb.mxu3 %v1624_v30  ;;  %1728 = vmatpush.msra.mxu1 %v1688_v2 }
0x1120   :  { %1652 = vmatpush.msrb.mxu3 %v1622_v33 }
0x1122   :  { %1653 = vmatpush.msrb.mxu3 %v1620_v35 }
0x1124   :  { %1654 = vmatpush.msrb.mxu3 %v1618_v36 }
0x1126   :  { %1655 = vmatpush.msrb.mxu3 %v1616_v37 }
0x1128   :  { %1656 = vmatpush.msrb.mxu3 %v1614_v41 }
0x112a   :  { %1657 = vmatpush.msrb.mxu3 %v1612_v51 }
0x112c   :  { %1658 = vmatpush.msrb.mxu3 %v1610_v17 }
0x117f   :  { %v1422_v62 = vpop.f32.mrf.mxu1 }
0x1180   :  { %1556 = vrot.lane.b32.xlu0 %v1422_v62, %s2084_s9  ;;  %v1703_v62 = vld [vmem:[#allocation9 + $0x90] sm:$0xff] }
0x1187   :  { %v1552_v8 = vpop.f32.mrf.mxu1 }
0x1188   :  { %1564 = vrot.lane.b32.xlu1 %v1552_v8, %s2083_s8  ;;  %v1687_v8 = vld [vmem:[#allocation9 + $0x10] sm:$0xff] }
0x1189   :  { %1729 = vmatpush.msra.mxu1 %v1687_v8 }
0x118b   :  { %1730 = vmatpush.msra.mxu1 %v1686_v12 }
0x118d   :  { %1731 = vmatpush.msra.mxu1 %v1685_v13 }
0x1198   :  { %v1487_v15 = vpop.f32.mrf.mxu3 }
0x1199   :  { %1560 = vrot.lane.b32.xlu2 %v1487_v15, %s2082_s6  ;;  %v1637_v15 = vperm.slane %v1634_v14, 1 }
0x11f2   :  { %v1557_v44 = vpop.permute.xlu0 %1556 }
0x11f3   :  { %v1567_v27 = vsel %vm172_vm1, %v2672_v40, %v1557_v44  ;;  %v1561_v45 = vpop.permute.xlu2 %1560  ;;  %v1708_v40 = vld [vmem:[#allocation9 + $0xb8] sm:$0xff] }
0x11f4   :  { %v1568_v4 = vsel %vm140_vm0, %v1567_v27, %v1561_v45  ;;  %1744 = vmatpush.msra.mxu3 %v1708_v40 }
0x11f6   :  { %1745 = vmatpush.msra.mxu3 %v1707_v48 }
0x11f8   :  { %1746 = vmatpush.msra.mxu3 %v1706_v50 }
0x11fa   :  { %v1565_v38 = vpop.permute.xlu1 %1564  ;;  %1747 = vmatpush.msra.mxu3 %v1705_v53 }
0x11fb   :  { %v1569_v46 = vsel %vm1234_vm11, %v1568_v4, %v1565_v38 }
0x11fc   :  { %1606 = vmatmul.f32.vlgmr.msrb.gmra.mxu2 %v1569_v46  ;;  %1748 = vmatpush.msra.mxu3 %v1704_v54 }
0x11fe   :  { %1749 = vmatpush.msra.mxu3 %v1703_v62 }
0x1200   :  { %1750 = vmatpush.msra.mxu3 %v1702_v60 }
0x1202   :  { %1751 = vmatpush.msra.mxu3 %v1701_v3 }
0x127f   :  { %v1607_v7 = vpop.f32.mrf.mxu2 }
0x1280   :  { %v1608_v42 = vadd.f32 %v1830_v57, %v1607_v7 }
0x1282   :  { %1813 = vmatmul.msk.f32.vlgmr.msrb.gmra.mxu3 %vm1234_vm11, %v1608_v42  ;;  %1814 = vmatmul.msk.f32.vlgmr.msrb.gmra.mxu0 %vm1234_vm11, %v1608_v42 }
0x12ff   :  { %v1680_v18 = vpop.f32.mrf.mxu0 }
0x1300   :  { %v1681_v6 = vadd.f32 %v1680_v18, %v1637_v15 }
0x1302   :  { %v1684_v20 = vmax.f32 %v1681_v6, 0.0 }
0x1304   :  { %1815 = vmatmul.msk.f32.vlgmr.msra.gmra.mxu3 %vm140_vm0, %v1684_v20 }
0x1305   :  { %v1660_v22 = vpop.f32.mrf.mxu3 }
0x1306   :  { %v1661_v19 = vadd.f32 %v1660_v22, %v1636_v25 }
0x1308   :  { %v1683_v21 = vmax.f32 %v1661_v19, 0.0 }
0x130a   :  { %1732 = vmatmul.f32.vlgmr.msra.gmra.mxu1 %v1683_v21 }
0x1387   :  { %v1733_v5 = vpop.f32.mrf.mxu1  ;;  %v1753_v26 = vpop.f32.mrf.mxu3 }
0x1388   :  { %v1734_v24 = vadd.f32 %v1831_v23, %v1733_v5 }
0x138a   :  { %v1754_v28 = vadd.f32 %v1753_v26, %v1734_v24 }
0x138c   :  { %1756 = vst [vmem:[%s2773_s26] sm:$0xff] %v1754_v28 }
0x138d   :  { %1761 = vsyncpa [#allocation3], 1 }
0x138e   :  { %1762 = vsyncpa [#allocation5], 1 }
0x138f   :  { %1763 = vsyncpa [#allocation8], 1 }

</bundles_post_ra>
